<compile_context>
chip_gen: v7x
topology: tpu7x:2x2x1
jax: 0.10.0
libtpu: 0.0.40
codegen_flags: <defaults>
</compile_context>

<pallas_src>
import numpy as np
import jax
import jax.numpy as jnp
from jax import lax
from jax.experimental import pallas as pl
from jax.experimental.pallas import tpu as pltpu

# TODO(synk): cfg.VMRN.UVTRANSE_REGULARIZATION is external config; fixed to 1.0 here.
UVTRANSE_REGULARIZATION = 1.0
NUM_REL = 3
LOC_DIM = 19
LOC_PAD = 128        # loc features zero-padded to one full lane group
OUT_PAD = 128        # lane-dense output slab: cols [0:NUM_REL] = logits
HID1 = 512
HID2 = 256
PEN_ROWS = 8         # per-tile penalty partial-sum slab rows ((8,128)-aligned)
VMEM_BUDGET = 44 * 1024 * 1024   # keep under v7x's 64 MiB/TC with headroom


def _cdiv(a, b):
  return -(-a // b)


def _round_up8(x):
  return max(8, _cdiv(x, 8) * 8)


def _choose_tile_n(n, requested):
  """Row tile: multiple of 8, <= padded n, and (v7x) grid >= 2 steps."""
  tile = _round_up8(min(int(requested), _round_up8(n)))
  if n > 8:
    # v7x has 2 TensorCores; keep the parallel grid at >= 2 steps so both
    # get work (no-op for large n where requested tile << n/2).
    tile = min(tile, _round_up8(_cdiv(n, 2)))
  return tile


def _vmem_estimate(tile, in_dim, w_bytes):
  """Rough VMEM requirement (bytes) for one grid step."""
  in_tile = (3 * tile * in_dim + tile * LOC_PAD) * 2        # bf16 inputs
  out_tile = tile * OUT_PAD * 4 + PEN_ROWS * OUT_PAD * 4    # f32 outputs
  interm = tile * (3 * HID1 + 4 * HID2 + OUT_PAD) * 4       # f32 intermediates
  # weights x2 as margin (covers the no-Buffered(1) fallback), i/o x2 buffers
  return 2 * w_bytes + 2 * in_tile + 2 * out_tile + interm


def _const_spec(shape):
  """VMEM-resident operand: constant block index; single-buffered if supported."""
  idx_map = lambda i: (0,) * len(shape)
  try:
    return pl.BlockSpec(shape, idx_map, pipeline_mode=pl.Buffered(1))
  except (TypeError, AttributeError):   # older jax without pipeline_mode
    return pl.BlockSpec(shape, idx_map)


# ----------------------------------------------------------------------------
# Pallas kernel: full dense forward for one row tile of pairs.
# ----------------------------------------------------------------------------
def _make_kernel(n_total, tile_n):
  f32 = jnp.float32

  def kernel(x_ref, loc_ref, w1_ref, b1_ref, w2_ref, b2_ref,
             wo1a_ref, wo1b_ref, bo1_ref, wo2_ref, bo2_ref,
             out_ref, pen_ref):
    embeds = []
    pen = jnp.zeros((tile_n, 1), f32)
    for e in range(3):        # subject / object / union MLPs
      h = jnp.dot(x_ref[e], w1_ref[e], preferred_element_type=f32) + b1_ref[e]
      h = jnp.maximum(h, 0.0).astype(w2_ref.dtype)
      h2 = jnp.dot(h, w2_ref[e], preferred_element_type=f32) + b2_ref[e]
      h2 = jnp.maximum(h2, 0.0)                      # f32, (tile_n, 256)
      embeds.append(h2)
      # clamp(||h||^2 - 1, min=0), accumulated over the three embeddings
      pen = pen + jnp.maximum(
          jnp.sum(h2 * h2, axis=1, keepdims=True) - 1.0, 0.0)

    hs, ho, hu = embeds
    appear = (hu - ho - hs).astype(wo1a_ref.dtype)   # x[2] - x[1] - x[0]

    # concat([appear, loc]) @ Wout1 split into two matmuls: zero-padded loc
    # lanes meet zero-padded wo1b rows, so the math matches exactly.
    h1 = (jnp.dot(appear, wo1a_ref[...], preferred_element_type=f32)
          + jnp.dot(loc_ref[...], wo1b_ref[...], preferred_element_type=f32)
          + bo1_ref[...])
    h1 = jnp.maximum(h1, 0.0).astype(wo2_ref.dtype)

    # wo2/bo2 zero-padded to 128 output columns -> lane-dense (tile_n, 128).
    out_ref[...] = (jnp.dot(h1, wo2_ref[...], preferred_element_type=f32)
                    + bo2_ref[...])

    # Per-tile penalty partial sum; mask rows past n_total (ragged last tile)
    # so garbage rows cannot poison the cross-row reduction.
    row = (pl.program_id(0) * tile_n
           + lax.broadcasted_iota(jnp.int32, (tile_n, 1), 0))
    pen = jnp.where(row < n_total, pen, 0.0)
    pen_ref[...] = jnp.full((PEN_ROWS, OUT_PAD), jnp.sum(pen), f32)

  return kernel


# ----------------------------------------------------------------------------
# One-time parameter preparation (cast / pad / stack, hoisted out of forward).
# ----------------------------------------------------------------------------
def prepare_params(params, compute_dtype=jnp.bfloat16):
  (w1s, b1s, w2s, b2s, w1o, b1o, w2o, b2o, w1u, b1u, w2u, b2u,
   wo1a, wo1b, bo1, wo2, bo2) = params
  cd, f32 = compute_dtype, jnp.float32

  w1_all = jnp.stack([w1s, w1o, w1u]).astype(cd)    # (3, in_dim, 512)
  b1_all = jnp.stack([b1s, b1o, b1u]).astype(f32)   # (3, 1, 512)
  w2_all = jnp.stack([w2s, w2o, w2u]).astype(cd)    # (3, 512, 256)
  b2_all = jnp.stack([b2s, b2o, b2u]).astype(f32)   # (3, 1, 256)
  wo1a_c = wo1a.astype(cd)                          # (256, 256)
  wo1b_p = jnp.pad(wo1b.astype(cd), ((0, LOC_PAD - LOC_DIM), (0, 0)))
  bo1_c = bo1.astype(f32)                           # (1, 256)
  wo2_p = jnp.pad(wo2.astype(cd), ((0, 0), (0, OUT_PAD - wo2.shape[1])))
  bo2_p = jnp.pad(bo2.astype(f32), ((0, 0), (0, OUT_PAD - bo2.shape[1])))
  return (w1_all, b1_all, w2_all, b2_all, wo1a_c, wo1b_p, bo1_c, wo2_p, bo2_p)


# ----------------------------------------------------------------------------
# Wrapper.
# ----------------------------------------------------------------------------
def uvtranse_pallas_forward(xs, xo, xu, loc19, prepared, *, training=False,
                            reg=UVTRANSE_REGULARIZATION, tile_n=1024,
                            compute_dtype=jnp.bfloat16):
  """Returns (logits (N, NUM_REL) f32, reg_loss scalar f32)."""
  n, in_dim = xs.shape
  if n == 0:
    return jnp.zeros((0, NUM_REL), jnp.float32), jnp.float32(0.0)

  cd = compute_dtype
  (w1_all, b1_all, w2_all, b2_all,
   wo1a_c, wo1b_p, bo1_c, wo2_p, bo2_p) = prepared
  w_bytes = sum(int(np.prod(p.shape)) * p.dtype.itemsize for p in prepared)

  tile = _choose_tile_n(n, tile_n)
  vmem_est = _vmem_estimate(tile, in_dim, w_bytes)
  while tile > 8 and vmem_est > VMEM_BUDGET:      # shrink if VMEM-bound
    tile = _round_up8(tile // 2)
    vmem_est = _vmem_estimate(tile, in_dim, w_bytes)
  num_tiles = _cdiv(n, tile)
  grid = (num_tiles,)

  # Per-call activation prep (row-sized, cheap): stack + cast + pad.
  x_all = jnp.stack([xs, xo, xu]).astype(cd)                       # (3, N, in_dim)
  loc_c = jnp.pad(loc19.astype(cd), ((0, 0), (0, LOC_PAD - LOC_DIM)))

  in_specs = [
      pl.BlockSpec((3, tile, in_dim), lambda i: (0, i, 0)),        # x_all
      pl.BlockSpec((tile, LOC_PAD), lambda i: (i, 0)),             # loc
      _const_spec(w1_all.shape), _const_spec(b1_all.shape),
      _const_spec(w2_all.shape), _const_spec(b2_all.shape),
      _const_spec(wo1a_c.shape), _const_spec(wo1b_p.shape),
      _const_spec(bo1_c.shape), _const_spec(wo2_p.shape),
      _const_spec(bo2_p.shape),
  ]
  out_specs = [
      pl.BlockSpec((tile, OUT_PAD), lambda i: (i, 0)),             # logits slab
      pl.BlockSpec((PEN_ROWS, OUT_PAD), lambda i: (i, 0)),         # penalty sums
  ]
  out_shape = (
      jax.ShapeDtypeStruct((n, OUT_PAD), jnp.float32),
      jax.ShapeDtypeStruct((num_tiles * PEN_ROWS, OUT_PAD), jnp.float32),
  )

  flops = 2 * n * (3 * (in_dim * HID1 + HID1 * HID2)
                   + HID2 * HID2 + LOC_PAD * HID2 + HID2 * OUT_PAD)
  bytes_accessed = (w_bytes
                    + 3 * n * in_dim * x_all.dtype.itemsize
                    + n * LOC_PAD * loc_c.dtype.itemsize
                    + n * OUT_PAD * 4
                    + num_tiles * PEN_ROWS * OUT_PAD * 4)
  vmem_limit = int(min(max(vmem_est + (8 << 20), 32 << 20), 48 << 20))

  out, pen_part = pl.pallas_call(
      _make_kernel(n, tile),
      grid=grid,
      in_specs=in_specs,
      out_specs=out_specs,
      out_shape=out_shape,
      compiler_params=pltpu.CompilerParams(
          dimension_semantics=("parallel",),     # shards rows across v7x TCs
          vmem_limit_bytes=vmem_limit),
      cost_estimate=pl.CostEstimate(
          flops=flops, transcendentals=0, bytes_accessed=bytes_accessed),
  )(x_all, loc_c, w1_all, b1_all, w2_all, b2_all,
    wo1a_c, wo1b_p, bo1_c, wo2_p, bo2_p)

  logits = out[:, :NUM_REL]
  if training:
    pen_sums = pen_part.reshape(num_tiles, PEN_ROWS, OUT_PAD)[:, 0, 0]
    reg_loss = jnp.float32(reg) * jnp.sum(pen_sums) / jnp.float32(n)
  else:
    reg_loss = jnp.float32(0.0)
  return logits, reg_loss


# ----------------------------------------------------------------------------
# Host-side glue (matches _generate_loc_feat / _encode_loc_feat semantics).
# ----------------------------------------------------------------------------
def generate_loc_feat(obj_num, boxes, is_ex, im_info, pair_num):
  """Python-loop pair enumeration, mirrors the PyTorch code exactly."""
  batch_size = im_info.shape[0]
  loc_feats = np.zeros((pair_num, 14), dtype=np.float32)
  pair_counter = 0
  for im_ind in range(obj_num.shape[0]):
    n = int(obj_num[im_ind])
    if n <= 1:
      continue
    prev = obj_num[:im_ind].astype(np.float64)
    begin_idx = (0.5 * prev ** 2 + 0.5 * prev).sum()
    cnt = 0.5 * float(n) ** 2 + 0.5 * float(n)
    im_boxes = boxes[int(begin_idx):int(begin_idx + cnt)]
    im_obj_boxes = im_boxes[:n]
    im_union_boxes = im_boxes[n:]
    union_counter = 0  # (kept exactly as in the reference: never incremented)
    for o1 in range(n):
      for o2 in range(o1 + 1, n):
        o1_box = im_obj_boxes[o1][1:5]
        o2_box = im_obj_boxes[o2][1:5]
        union_box = im_union_boxes[union_counter][1:5]
        loc_feats[pair_counter] = np.concatenate(
            (o1_box, o2_box, union_box, im_info[im_ind % batch_size][:2]))
        pair_counter += 1
        if is_ex:
          loc_feats[pair_counter] = np.concatenate(
              (o2_box, o1_box, union_box, im_info[im_ind % batch_size][:2]))
          pair_counter += 1
  assert pair_counter == pair_num
  return loc_feats


def encode_loc_feat(lf):
  """Vectorized version of _encode_loc_feat (14 -> 19 features)."""
  lf = jnp.asarray(lf, jnp.float32)
  w_i, h_i = lf[:, 13], lf[:, 12]
  x_s, y_s = (lf[:, 0] + lf[:, 2]) / 2.0, (lf[:, 1] + lf[:, 3]) / 2.0
  w_s, h_s = lf[:, 2] - lf[:, 0], lf[:, 3] - lf[:, 1]
  a_s = w_s * h_s
  x_o, y_o = (lf[:, 4] + lf[:, 6]) / 2.0, (lf[:, 5] + lf[:, 7]) / 2.0
  w_o, h_o = lf[:, 6] - lf[:, 4], lf[:, 7] - lf[:, 5]
  a_o = w_o * h_o
  a_u = (lf[:, 10] - lf[:, 8]) * (lf[:, 11] - lf[:, 9])
  cols = [
      x_s / w_i, y_s / h_i, (x_s + w_s) / w_i, (y_s + h_s) / h_i,
      a_s / (w_i * h_i),
      x_o / w_i, y_o / h_i, (x_o + w_o) / w_i, (y_o + h_o) / h_i,
      a_o / (w_i * h_i),
      (x_s - x_o) / w_o, (y_s - y_o) / h_o,
      jnp.log(w_s / w_o), jnp.log(h_s / h_o),
      (x_o - x_s) / w_s, (y_o - y_s) / h_s,
      jnp.log(w_o / w_s), jnp.log(h_o / h_s),
      a_u / (w_i * h_i),
  ]
  return jnp.stack(cols, axis=1).astype(jnp.float32)


# ----------------------------------------------------------------------------
# Deterministic parameter initialization (nn.Linear-style uniform), f32 master.
# ----------------------------------------------------------------------------
def init_params(key, input_dim, num_rel=NUM_REL):
  def linear(k, in_d, out_d):
    kw, kb = jax.random.split(k)
    bound = 1.0 / np.sqrt(in_d)
    w = jax.random.uniform(kw, (in_d, out_d), jnp.float32, -bound, bound)
    b = jax.random.uniform(kb, (1, out_d), jnp.float32, -bound, bound)
    return w, b

  keys = jax.random.split(key, 8)
  params = []
  # f_s, f_o, f_u: Linear(in,512)+ReLU, Linear(512,256)+ReLU
  for i in range(3):
    w1, b1 = linear(keys[2 * i], input_dim, HID1)
    w2, b2 = linear(keys[2 * i + 1], HID1, HID2)
    params += [w1, b1, w2, b2]
  # Output head: Linear(256+19, 256)+ReLU, Linear(256, num_rel)
  wo1, bo1 = linear(keys[6], HID2 + LOC_DIM, HID2)
  wo2, bo2 = linear(keys[7], HID2, num_rel)
  params += [wo1[:HID2], wo1[HID2:], bo1, wo2, bo2]
  return params


# ----------------------------------------------------------------------------
# Pure-JAX reference with the same bf16-operand / f32-accumulate recipe.
# ----------------------------------------------------------------------------
def reference_forward(xs, xo, xu, loc19, params, training, reg,
                      compute_dtype=jnp.bfloat16):
  cd = compute_dtype
  f32 = jnp.float32
  (w1s, b1s, w2s, b2s, w1o, b1o, w2o, b2o, w1u, b1u, w2u, b2u,
   wo1a, wo1b, bo1, wo2, bo2) = params

  def mlp(x, w1, b1, w2, b2):
    h = jnp.dot(x.astype(cd), w1.astype(cd), preferred_element_type=f32) + b1
    h = jnp.maximum(h, 0.0).astype(cd)
    h2 = jnp.dot(h, w2.astype(cd), preferred_element_type=f32) + b2
    return jnp.maximum(h2, 0.0)

  hs = mlp(xs, w1s, b1s, w2s, b2s)
  ho = mlp(xo, w1o, b1o, w2o, b2o)
  hu = mlp(xu, w1u, b1u, w2u, b2u)
  pen = (jnp.maximum((hs ** 2).sum(1) - 1.0, 0.0)
         + jnp.maximum((ho ** 2).sum(1) - 1.0, 0.0)
         + jnp.maximum((hu ** 2).sum(1) - 1.0, 0.0))
  reg_loss = reg * pen.mean() if training else jnp.float32(0.0)
  appear = (hu - ho - hs).astype(cd)
  h1 = (jnp.dot(appear, wo1a.astype(cd), preferred_element_type=f32)
        + jnp.dot(loc19.astype(cd), wo1b.astype(cd), preferred_element_type=f32)
        + bo1)
  h1 = jnp.maximum(h1, 0.0).astype(cd)
  logits = jnp.dot(h1, wo2.astype(cd), preferred_element_type=f32) + bo2
  return logits, reg_loss


# ----------------------------------------------------------------------------
if __name__ == "__main__":
  key = jax.random.PRNGKey(0)
  k_par, k0, k1, k2, kbox = jax.random.split(key, 5)

  input_dim = 32          # obj_pair_feat_dim (small synthetic value)
  batch_size = 2
  obj_num = np.array([5, 5], dtype=np.int64)   # 5 objects / image
  is_ex = False
  # pairs per image = n*(n-1)/2 -> 10 + 10 = 20 (ragged vs the chosen tile)
  pair_num = int(sum(n * (n - 1) // 2 * (2 if is_ex else 1) for n in obj_num))

  # boxes: per image 0.5*n^2 + 0.5*n rows of [idx, x1, y1, x2, y2]
  total_boxes = int(sum(0.5 * float(n) ** 2 + 0.5 * float(n) for n in obj_num))
  xy1 = jax.random.uniform(kbox, (total_boxes, 2), jnp.float32, 10.0, 300.0)
  wh = jax.random.uniform(jax.random.fold_in(kbox, 1), (total_boxes, 2),
                          jnp.float32, 20.0, 120.0)
  boxes = np.concatenate(
      [np.zeros((total_boxes, 1), np.float32),
       np.asarray(xy1), np.asarray(xy1 + wh)], axis=1).astype(np.float32)
  im_info = np.array([[600.0, 800.0, 1.0]] * batch_size, dtype=np.float32)

  # appearance features x[0], x[1], x[2]
  x0 = jax.random.normal(k0, (pair_num, input_dim), jnp.float32)
  x1 = jax.random.normal(k1, (pair_num, input_dim), jnp.float32)
  x2 = jax.random.normal(k2, (pair_num, input_dim), jnp.float32)

  # host glue: location features (data-dependent Python loop)
  loc14 = generate_loc_feat(obj_num, boxes, is_ex, im_info, pair_num)
  loc19 = encode_loc_feat(loc14)

  params = init_params(k_par, input_dim)
  prepared = prepare_params(params)          # one-time cast/pad/stack (cached)

  training = True
  # Default tile_n=1024 gets clamped to 16 here (>=2 grid steps for v7x),
  # exercising a multi-block grid with a ragged, masked last tile.
  logits, reg_loss = uvtranse_pallas_forward(
      x0, x1, x2, loc19, prepared, training=training)
  logits = jax.block_until_ready(logits)
  reg_loss = jax.block_until_ready(reg_loss)

  ref_logits, ref_reg = reference_forward(
      x0, x1, x2, loc19, params, training, UVTRANSE_REGULARIZATION)

  assert logits.shape == (pair_num, NUM_REL)
  np.testing.assert_allclose(np.asarray(logits), np.asarray(ref_logits),
                             rtol=2e-2, atol=2e-2)
  np.testing.assert_allclose(np.asarray(reg_loss), np.asarray(ref_reg),
                             rtol=2e-2, atol=2e-2)
  print("KERNEL_OK")
</pallas_src>

<mosaic_0001>
module attributes {stable_mosaic.version = 11 : i64} {
  func.func @kernel(%arg0: i32, %arg1: memref<3x16x32xbf16, #tpu.memory_space<vmem>>, %arg2: memref<16x128xbf16, #tpu.memory_space<vmem>>, %arg3: memref<3x32x512xbf16, #tpu.memory_space<vmem>>, %arg4: memref<3x1x512xf32, #tpu.memory_space<vmem>>, %arg5: memref<3x512x256xbf16, #tpu.memory_space<vmem>>, %arg6: memref<3x1x256xf32, #tpu.memory_space<vmem>>, %arg7: memref<256x256xbf16, #tpu.memory_space<vmem>>, %arg8: memref<128x256xbf16, #tpu.memory_space<vmem>>, %arg9: memref<1x256xf32, #tpu.memory_space<vmem>>, %arg10: memref<256x128xbf16, #tpu.memory_space<vmem>>, %arg11: memref<1x128xf32, #tpu.memory_space<vmem>>, %arg12: memref<16x128xf32, #tpu.memory_space<vmem>>, %arg13: memref<8x128xf32, #tpu.memory_space<vmem>>) attributes {dimension_semantics = [#tpu.dimension_semantics<parallel>], iteration_bounds = array<i64: 2>, scalar_prefetch = 0 : i64, scratch_operands = 0 : i64, tpu.core_type = #tpu.core_type<tc>, window_params = [{transform_indices = @transform_0, window_bounds = array<i64: 3, 16, 32>}, {transform_indices = @transform_1, window_bounds = array<i64: 16, 128>}, {pipeline_mode = #tpu.pipeline_mode<synchronous>, transform_indices = @transform_2, window_bounds = array<i64: 3, 32, 512>}, {pipeline_mode = #tpu.pipeline_mode<synchronous>, transform_indices = @transform_3, window_bounds = array<i64: 3, 1, 512>}, {pipeline_mode = #tpu.pipeline_mode<synchronous>, transform_indices = @transform_4, window_bounds = array<i64: 3, 512, 256>}, {pipeline_mode = #tpu.pipeline_mode<synchronous>, transform_indices = @transform_5, window_bounds = array<i64: 3, 1, 256>}, {pipeline_mode = #tpu.pipeline_mode<synchronous>, transform_indices = @transform_6, window_bounds = array<i64: 256, 256>}, {pipeline_mode = #tpu.pipeline_mode<synchronous>, transform_indices = @transform_7, window_bounds = array<i64: 128, 256>}, {pipeline_mode = #tpu.pipeline_mode<synchronous>, transform_indices = @transform_8, window_bounds = array<i64: 1, 256>}, {pipeline_mode = #tpu.pipeline_mode<synchronous>, transform_indices = @transform_9, window_bounds = array<i64: 256, 128>}, {pipeline_mode = #tpu.pipeline_mode<synchronous>, transform_indices = @transform_10, window_bounds = array<i64: 1, 128>}, {transform_indices = @transform_11, window_bounds = array<i64: 16, 128>}, {transform_indices = @transform_12, window_bounds = array<i64: 8, 128>}]} {
    %cst = arith.constant 0.000000e+00 : f32
    %0 = vector.broadcast %cst : f32 to vector<16x1xf32>
    %c0 = arith.constant 0 : index
    %c0_0 = arith.constant 0 : index
    %c0_1 = arith.constant 0 : index
    %1 = vector.load %arg1[%c0, %c0_0, %c0_1] : memref<3x16x32xbf16, #tpu.memory_space<vmem>>, vector<1x16x32xbf16>
    %2 = vector.shape_cast %1 : vector<1x16x32xbf16> to vector<16x32xbf16>
    %c0_2 = arith.constant 0 : index
    %c0_3 = arith.constant 0 : index
    %c0_4 = arith.constant 0 : index
    %3 = vector.load %arg3[%c0_2, %c0_3, %c0_4] : memref<3x32x512xbf16, #tpu.memory_space<vmem>>, vector<1x32x512xbf16>
    %4 = vector.shape_cast %3 : vector<1x32x512xbf16> to vector<32x512xbf16>
    %cst_5 = arith.constant dense<0.000000e+00> : vector<16x512xf32>
    %5 = tpu.matmul %2, %4, %cst_5 {dimension_numbers = #tpu.dot_dimension_numbers<[1], [0], [0], [1], [0, 0, 1, 1], [], []>} : vector<16x32xbf16>, vector<32x512xbf16>, vector<16x512xf32> -> vector<16x512xf32>
    %c0_6 = arith.constant 0 : index
    %c0_7 = arith.constant 0 : index
    %c0_8 = arith.constant 0 : index
    %6 = vector.load %arg4[%c0_6, %c0_7, %c0_8] : memref<3x1x512xf32, #tpu.memory_space<vmem>>, vector<1x1x512xf32>
    %7 = vector.shape_cast %6 : vector<1x1x512xf32> to vector<1x512xf32>
    %8 = vector.broadcast %7 : vector<1x512xf32> to vector<16x512xf32>
    %9 = arith.addf %5, %8 : vector<16x512xf32>
    %cst_9 = arith.constant 0.000000e+00 : f32
    %10 = vector.broadcast %cst_9 : f32 to vector<16x512xf32>
    %11 = arith.maximumf %9, %10 : vector<16x512xf32>
    %12 = arith.truncf %11 : vector<16x512xf32> to vector<16x512xbf16>
    %c0_10 = arith.constant 0 : index
    %c0_11 = arith.constant 0 : index
    %c0_12 = arith.constant 0 : index
    %13 = vector.load %arg5[%c0_10, %c0_11, %c0_12] : memref<3x512x256xbf16, #tpu.memory_space<vmem>>, vector<1x512x256xbf16>
    %14 = vector.shape_cast %13 : vector<1x512x256xbf16> to vector<512x256xbf16>
    %cst_13 = arith.constant dense<0.000000e+00> : vector<16x256xf32>
    %15 = tpu.matmul %12, %14, %cst_13 {dimension_numbers = #tpu.dot_dimension_numbers<[1], [0], [0], [1], [0, 0, 1, 1], [], []>} : vector<16x512xbf16>, vector<512x256xbf16>, vector<16x256xf32> -> vector<16x256xf32>
    %c0_14 = arith.constant 0 : index
    %c0_15 = arith.constant 0 : index
    %c0_16 = arith.constant 0 : index
    %16 = vector.load %arg6[%c0_14, %c0_15, %c0_16] : memref<3x1x256xf32, #tpu.memory_space<vmem>>, vector<1x1x256xf32>
    %17 = vector.shape_cast %16 : vector<1x1x256xf32> to vector<1x256xf32>
    %18 = vector.broadcast %17 : vector<1x256xf32> to vector<16x256xf32>
    %19 = arith.addf %15, %18 : vector<16x256xf32>
    %cst_17 = arith.constant 0.000000e+00 : f32
    %20 = vector.broadcast %cst_17 : f32 to vector<16x256xf32>
    %21 = arith.maximumf %19, %20 : vector<16x256xf32>
    %22 = arith.mulf %21, %21 : vector<16x256xf32>
    %cst_18 = arith.constant dense<0.000000e+00> : vector<16xf32>
    %23 = vector.multi_reduction <add>, %22, %cst_18 [1] : vector<16x256xf32> to vector<16xf32>
    %24 = vector.shape_cast %23 : vector<16xf32> to vector<16x1xf32>
    %cst_19 = arith.constant 1.000000e+00 : f32
    %25 = vector.broadcast %cst_19 : f32 to vector<16x1xf32>
    %26 = arith.subf %24, %25 : vector<16x1xf32>
    %cst_20 = arith.constant 0.000000e+00 : f32
    %27 = vector.broadcast %cst_20 : f32 to vector<16x1xf32>
    %28 = arith.maximumf %26, %27 : vector<16x1xf32>
    %29 = arith.addf %0, %28 : vector<16x1xf32>
    %c1 = arith.constant 1 : index
    %c0_21 = arith.constant 0 : index
    %c0_22 = arith.constant 0 : index
    %30 = vector.load %arg1[%c1, %c0_21, %c0_22] : memref<3x16x32xbf16, #tpu.memory_space<vmem>>, vector<1x16x32xbf16>
    %31 = vector.shape_cast %30 : vector<1x16x32xbf16> to vector<16x32xbf16>
    %c1_23 = arith.constant 1 : index
    %c0_24 = arith.constant 0 : index
    %c0_25 = arith.constant 0 : index
    %32 = vector.load %arg3[%c1_23, %c0_24, %c0_25] : memref<3x32x512xbf16, #tpu.memory_space<vmem>>, vector<1x32x512xbf16>
    %33 = vector.shape_cast %32 : vector<1x32x512xbf16> to vector<32x512xbf16>
    %cst_26 = arith.constant dense<0.000000e+00> : vector<16x512xf32>
    %34 = tpu.matmul %31, %33, %cst_26 {dimension_numbers = #tpu.dot_dimension_numbers<[1], [0], [0], [1], [0, 0, 1, 1], [], []>} : vector<16x32xbf16>, vector<32x512xbf16>, vector<16x512xf32> -> vector<16x512xf32>
    %c1_27 = arith.constant 1 : index
    %c0_28 = arith.constant 0 : index
    %c0_29 = arith.constant 0 : index
    %35 = vector.load %arg4[%c1_27, %c0_28, %c0_29] : memref<3x1x512xf32, #tpu.memory_space<vmem>>, vector<1x1x512xf32>
    %36 = vector.shape_cast %35 : vector<1x1x512xf32> to vector<1x512xf32>
    %37 = vector.broadcast %36 : vector<1x512xf32> to vector<16x512xf32>
    %38 = arith.addf %34, %37 : vector<16x512xf32>
    %cst_30 = arith.constant 0.000000e+00 : f32
    %39 = vector.broadcast %cst_30 : f32 to vector<16x512xf32>
    %40 = arith.maximumf %38, %39 : vector<16x512xf32>
    %41 = arith.truncf %40 : vector<16x512xf32> to vector<16x512xbf16>
    %c1_31 = arith.constant 1 : index
    %c0_32 = arith.constant 0 : index
    %c0_33 = arith.constant 0 : index
    %42 = vector.load %arg5[%c1_31, %c0_32, %c0_33] : memref<3x512x256xbf16, #tpu.memory_space<vmem>>, vector<1x512x256xbf16>
    %43 = vector.shape_cast %42 : vector<1x512x256xbf16> to vector<512x256xbf16>
    %cst_34 = arith.constant dense<0.000000e+00> : vector<16x256xf32>
    %44 = tpu.matmul %41, %43, %cst_34 {dimension_numbers = #tpu.dot_dimension_numbers<[1], [0], [0], [1], [0, 0, 1, 1], [], []>} : vector<16x512xbf16>, vector<512x256xbf16>, vector<16x256xf32> -> vector<16x256xf32>
    %c1_35 = arith.constant 1 : index
    %c0_36 = arith.constant 0 : index
    %c0_37 = arith.constant 0 : index
    %45 = vector.load %arg6[%c1_35, %c0_36, %c0_37] : memref<3x1x256xf32, #tpu.memory_space<vmem>>, vector<1x1x256xf32>
    %46 = vector.shape_cast %45 : vector<1x1x256xf32> to vector<1x256xf32>
    %47 = vector.broadcast %46 : vector<1x256xf32> to vector<16x256xf32>
    %48 = arith.addf %44, %47 : vector<16x256xf32>
    %cst_38 = arith.constant 0.000000e+00 : f32
    %49 = vector.broadcast %cst_38 : f32 to vector<16x256xf32>
    %50 = arith.maximumf %48, %49 : vector<16x256xf32>
    %51 = arith.mulf %50, %50 : vector<16x256xf32>
    %cst_39 = arith.constant dense<0.000000e+00> : vector<16xf32>
    %52 = vector.multi_reduction <add>, %51, %cst_39 [1] : vector<16x256xf32> to vector<16xf32>
    %53 = vector.shape_cast %52 : vector<16xf32> to vector<16x1xf32>
    %cst_40 = arith.constant 1.000000e+00 : f32
    %54 = vector.broadcast %cst_40 : f32 to vector<16x1xf32>
    %55 = arith.subf %53, %54 : vector<16x1xf32>
    %cst_41 = arith.constant 0.000000e+00 : f32
    %56 = vector.broadcast %cst_41 : f32 to vector<16x1xf32>
    %57 = arith.maximumf %55, %56 : vector<16x1xf32>
    %58 = arith.addf %29, %57 : vector<16x1xf32>
    %c2 = arith.constant 2 : index
    %c0_42 = arith.constant 0 : index
    %c0_43 = arith.constant 0 : index
    %59 = vector.load %arg1[%c2, %c0_42, %c0_43] : memref<3x16x32xbf16, #tpu.memory_space<vmem>>, vector<1x16x32xbf16>
    %60 = vector.shape_cast %59 : vector<1x16x32xbf16> to vector<16x32xbf16>
    %c2_44 = arith.constant 2 : index
    %c0_45 = arith.constant 0 : index
    %c0_46 = arith.constant 0 : index
    %61 = vector.load %arg3[%c2_44, %c0_45, %c0_46] : memref<3x32x512xbf16, #tpu.memory_space<vmem>>, vector<1x32x512xbf16>
    %62 = vector.shape_cast %61 : vector<1x32x512xbf16> to vector<32x512xbf16>
    %cst_47 = arith.constant dense<0.000000e+00> : vector<16x512xf32>
    %63 = tpu.matmul %60, %62, %cst_47 {dimension_numbers = #tpu.dot_dimension_numbers<[1], [0], [0], [1], [0, 0, 1, 1], [], []>} : vector<16x32xbf16>, vector<32x512xbf16>, vector<16x512xf32> -> vector<16x512xf32>
    %c2_48 = arith.constant 2 : index
    %c0_49 = arith.constant 0 : index
    %c0_50 = arith.constant 0 : index
    %64 = vector.load %arg4[%c2_48, %c0_49, %c0_50] : memref<3x1x512xf32, #tpu.memory_space<vmem>>, vector<1x1x512xf32>
    %65 = vector.shape_cast %64 : vector<1x1x512xf32> to vector<1x512xf32>
    %66 = vector.broadcast %65 : vector<1x512xf32> to vector<16x512xf32>
    %67 = arith.addf %63, %66 : vector<16x512xf32>
    %cst_51 = arith.constant 0.000000e+00 : f32
    %68 = vector.broadcast %cst_51 : f32 to vector<16x512xf32>
    %69 = arith.maximumf %67, %68 : vector<16x512xf32>
    %70 = arith.truncf %69 : vector<16x512xf32> to vector<16x512xbf16>
    %c2_52 = arith.constant 2 : index
    %c0_53 = arith.constant 0 : index
    %c0_54 = arith.constant 0 : index
    %71 = vector.load %arg5[%c2_52, %c0_53, %c0_54] : memref<3x512x256xbf16, #tpu.memory_space<vmem>>, vector<1x512x256xbf16>
    %72 = vector.shape_cast %71 : vector<1x512x256xbf16> to vector<512x256xbf16>
    %cst_55 = arith.constant dense<0.000000e+00> : vector<16x256xf32>
    %73 = tpu.matmul %70, %72, %cst_55 {dimension_numbers = #tpu.dot_dimension_numbers<[1], [0], [0], [1], [0, 0, 1, 1], [], []>} : vector<16x512xbf16>, vector<512x256xbf16>, vector<16x256xf32> -> vector<16x256xf32>
    %c2_56 = arith.constant 2 : index
    %c0_57 = arith.constant 0 : index
    %c0_58 = arith.constant 0 : index
    %74 = vector.load %arg6[%c2_56, %c0_57, %c0_58] : memref<3x1x256xf32, #tpu.memory_space<vmem>>, vector<1x1x256xf32>
    %75 = vector.shape_cast %74 : vector<1x1x256xf32> to vector<1x256xf32>
    %76 = vector.broadcast %75 : vector<1x256xf32> to vector<16x256xf32>
    %77 = arith.addf %73, %76 : vector<16x256xf32>
    %cst_59 = arith.constant 0.000000e+00 : f32
    %78 = vector.broadcast %cst_59 : f32 to vector<16x256xf32>
    %79 = arith.maximumf %77, %78 : vector<16x256xf32>
    %80 = arith.mulf %79, %79 : vector<16x256xf32>
    %cst_60 = arith.constant dense<0.000000e+00> : vector<16xf32>
    %81 = vector.multi_reduction <add>, %80, %cst_60 [1] : vector<16x256xf32> to vector<16xf32>
    %82 = vector.shape_cast %81 : vector<16xf32> to vector<16x1xf32>
    %cst_61 = arith.constant 1.000000e+00 : f32
    %83 = vector.broadcast %cst_61 : f32 to vector<16x1xf32>
    %84 = arith.subf %82, %83 : vector<16x1xf32>
    %cst_62 = arith.constant 0.000000e+00 : f32
    %85 = vector.broadcast %cst_62 : f32 to vector<16x1xf32>
    %86 = arith.maximumf %84, %85 : vector<16x1xf32>
    %87 = arith.addf %58, %86 : vector<16x1xf32>
    %88 = arith.subf %79, %50 : vector<16x256xf32>
    %89 = arith.subf %88, %21 : vector<16x256xf32>
    %90 = arith.truncf %89 : vector<16x256xf32> to vector<16x256xbf16>
    %c0_63 = arith.constant 0 : index
    %c0_64 = arith.constant 0 : index
    %91 = vector.load %arg7[%c0_63, %c0_64] : memref<256x256xbf16, #tpu.memory_space<vmem>>, vector<256x256xbf16>
    %cst_65 = arith.constant dense<0.000000e+00> : vector<16x256xf32>
    %92 = tpu.matmul %90, %91, %cst_65 {dimension_numbers = #tpu.dot_dimension_numbers<[1], [0], [0], [1], [0, 0, 1, 1], [], []>} : vector<16x256xbf16>, vector<256x256xbf16>, vector<16x256xf32> -> vector<16x256xf32>
    %c0_66 = arith.constant 0 : index
    %c0_67 = arith.constant 0 : index
    %93 = vector.load %arg2[%c0_66, %c0_67] : memref<16x128xbf16, #tpu.memory_space<vmem>>, vector<16x128xbf16>
    %c0_68 = arith.constant 0 : index
    %c0_69 = arith.constant 0 : index
    %94 = vector.load %arg8[%c0_68, %c0_69] : memref<128x256xbf16, #tpu.memory_space<vmem>>, vector<128x256xbf16>
    %cst_70 = arith.constant dense<0.000000e+00> : vector<16x256xf32>
    %95 = tpu.matmul %93, %94, %cst_70 {dimension_numbers = #tpu.dot_dimension_numbers<[1], [0], [0], [1], [0, 0, 1, 1], [], []>} : vector<16x128xbf16>, vector<128x256xbf16>, vector<16x256xf32> -> vector<16x256xf32>
    %96 = arith.addf %92, %95 : vector<16x256xf32>
    %c0_71 = arith.constant 0 : index
    %c0_72 = arith.constant 0 : index
    %97 = vector.load %arg9[%c0_71, %c0_72] : memref<1x256xf32, #tpu.memory_space<vmem>>, vector<1x256xf32>
    %98 = vector.broadcast %97 : vector<1x256xf32> to vector<16x256xf32>
    %99 = arith.addf %96, %98 : vector<16x256xf32>
    %cst_73 = arith.constant 0.000000e+00 : f32
    %100 = vector.broadcast %cst_73 : f32 to vector<16x256xf32>
    %101 = arith.maximumf %99, %100 : vector<16x256xf32>
    %102 = arith.truncf %101 : vector<16x256xf32> to vector<16x256xbf16>
    %c0_74 = arith.constant 0 : index
    %c0_75 = arith.constant 0 : index
    %103 = vector.load %arg10[%c0_74, %c0_75] : memref<256x128xbf16, #tpu.memory_space<vmem>>, vector<256x128xbf16>
    %cst_76 = arith.constant dense<0.000000e+00> : vector<16x128xf32>
    %104 = tpu.matmul %102, %103, %cst_76 {dimension_numbers = #tpu.dot_dimension_numbers<[1], [0], [0], [1], [0, 0, 1, 1], [], []>} : vector<16x256xbf16>, vector<256x128xbf16>, vector<16x128xf32> -> vector<16x128xf32>
    %c0_77 = arith.constant 0 : index
    %c0_78 = arith.constant 0 : index
    %105 = vector.load %arg11[%c0_77, %c0_78] : memref<1x128xf32, #tpu.memory_space<vmem>>, vector<1x128xf32>
    %106 = vector.broadcast %105 : vector<1x128xf32> to vector<16x128xf32>
    %107 = arith.addf %104, %106 : vector<16x128xf32>
    %c0_79 = arith.constant 0 : index
    %c0_80 = arith.constant 0 : index
    %108 = vector.load %arg12[%c0_79, %c0_80] : memref<16x128xf32, #tpu.memory_space<vmem>>, vector<16x128xf32>
    tpu.vector_store %arg12[%c0_79, %c0_80], %107 {strides = array<i32>} : memref<16x128xf32, #tpu.memory_space<vmem>>, vector<16x128xf32>,
    %c16_i32 = arith.constant 16 : i32
    %109 = arith.muli %arg0, %c16_i32 : i32
    %110 = tpu.iota {dimensions = array<i32: 0>} : vector<16x1xi32>
    %111 = vector.broadcast %109 : i32 to vector<16x1xi32>
    %112 = arith.addi %111, %110 : vector<16x1xi32>
    %c20_i32 = arith.constant 20 : i32
    %113 = vector.broadcast %c20_i32 : i32 to vector<16x1xi32>
    %114 = arith.cmpi slt, %112, %113 : vector<16x1xi32>
    %cst_81 = arith.constant 0.000000e+00 : f32
    %115 = vector.broadcast %cst_81 : f32 to vector<16x1xf32>
    %116 = arith.select %114, %87, %115 : vector<16x1xi1>, vector<16x1xf32>
    %117 = vector.shape_cast %116 : vector<16x1xf32> to vector<1x16x1xf32>
    %cst_82 = arith.constant dense<0.000000e+00> : vector<1xf32>
    %118 = vector.multi_reduction <add>, %117, %cst_82 [1, 2] : vector<1x16x1xf32> to vector<1xf32>
    %119 = vector.shape_cast %118 : vector<1xf32> to vector<1x1x1xf32>
    %120 = vector.extract %119[0, 0, 0] : f32 from vector<1x1x1xf32>
    %121 = vector.broadcast %120 : f32 to vector<8x128xf32>
    %c0_83 = arith.constant 0 : index
    %c0_84 = arith.constant 0 : index
    %122 = vector.load %arg13[%c0_83, %c0_84] : memref<8x128xf32, #tpu.memory_space<vmem>>, vector<8x128xf32>
    tpu.vector_store %arg13[%c0_83, %c0_84], %121 {strides = array<i32>} : memref<8x128xf32, #tpu.memory_space<vmem>>, vector<8x128xf32>,
    return
  }
  func.func @transform_0(%arg0: i32) -> (i32, i32, i32) {
    %c0_i32 = arith.constant 0 : i32
    %c0_i32_0 = arith.constant 0 : i32
    %c0_i32_1 = arith.constant 0 : i32
    return %c0_i32, %arg0, %c0_i32_0 : i32, i32, i32
  }
  func.func @transform_1(%arg0: i32) -> (i32, i32) {
    %c0_i32 = arith.constant 0 : i32
    %c0_i32_0 = arith.constant 0 : i32
    return %arg0, %c0_i32 : i32, i32
  }
  func.func @transform_2(%arg0: i32) -> (i32, i32, i32) {
    %c0_i32 = arith.constant 0 : i32
    %c0_i32_0 = arith.constant 0 : i32
    %c0_i32_1 = arith.constant 0 : i32
    %c0_i32_2 = arith.constant 0 : i32
    return %c0_i32, %c0_i32_0, %c0_i32_1 : i32, i32, i32
  }
  func.func @transform_3(%arg0: i32) -> (i32, i32, i32) {
    %c0_i32 = arith.constant 0 : i32
    %c0_i32_0 = arith.constant 0 : i32
    %c0_i32_1 = arith.constant 0 : i32
    %c0_i32_2 = arith.constant 0 : i32
    return %c0_i32, %c0_i32_0, %c0_i32_1 : i32, i32, i32
  }
  func.func @transform_4(%arg0: i32) -> (i32, i32, i32) {
    %c0_i32 = arith.constant 0 : i32
    %c0_i32_0 = arith.constant 0 : i32
    %c0_i32_1 = arith.constant 0 : i32
    %c0_i32_2 = arith.constant 0 : i32
    return %c0_i32, %c0_i32_0, %c0_i32_1 : i32, i32, i32
  }
  func.func @transform_5(%arg0: i32) -> (i32, i32, i32) {
    %c0_i32 = arith.constant 0 : i32
    %c0_i32_0 = arith.constant 0 : i32
    %c0_i32_1 = arith.constant 0 : i32
    %c0_i32_2 = arith.constant 0 : i32
    return %c0_i32, %c0_i32_0, %c0_i32_1 : i32, i32, i32
  }
  func.func @transform_6(%arg0: i32) -> (i32, i32) {
    %c0_i32 = arith.constant 0 : i32
    %c0_i32_0 = arith.constant 0 : i32
    %c0_i32_1 = arith.constant 0 : i32
    return %c0_i32, %c0_i32_0 : i32, i32
  }
  func.func @transform_7(%arg0: i32) -> (i32, i32) {
    %c0_i32 = arith.constant 0 : i32
    %c0_i32_0 = arith.constant 0 : i32
    %c0_i32_1 = arith.constant 0 : i32
    return %c0_i32, %c0_i32_0 : i32, i32
  }
  func.func @transform_8(%arg0: i32) -> (i32, i32) {
    %c0_i32 = arith.constant 0 : i32
    %c0_i32_0 = arith.constant 0 : i32
    %c0_i32_1 = arith.constant 0 : i32
    return %c0_i32, %c0_i32_0 : i32, i32
  }
  func.func @transform_9(%arg0: i32) -> (i32, i32) {
    %c0_i32 = arith.constant 0 : i32
    %c0_i32_0 = arith.constant 0 : i32
    %c0_i32_1 = arith.constant 0 : i32
    return %c0_i32, %c0_i32_0 : i32, i32
  }
  func.func @transform_10(%arg0: i32) -> (i32, i32) {
    %c0_i32 = arith.constant 0 : i32
    %c0_i32_0 = arith.constant 0 : i32
    %c0_i32_1 = arith.constant 0 : i32
    return %c0_i32, %c0_i32_0 : i32, i32
  }
  func.func @transform_11(%arg0: i32) -> (i32, i32) {
    %c0_i32 = arith.constant 0 : i32
    %c0_i32_0 = arith.constant 0 : i32
    return %arg0, %c0_i32 : i32, i32
  }
  func.func @transform_12(%arg0: i32) -> (i32, i32) {
    %c0_i32 = arith.constant 0 : i32
    %c0_i32_0 = arith.constant 0 : i32
    return %arg0, %c0_i32 : i32, i32
  }
}

</mosaic_0001>

<bundles_post_ra>
// kernel: tpu_custom_call.1
= control target key start
LH: loop header
LB: loop body
LE: loop exit
PB: predicated region body
PF: predicated region fallthrough
CT: control target
= control target key end

     0   :  { %s5376_s0 = inlined_call_operand.hbm [shape: bf16[3,20,32], index: 0, kind: input, shape index: {}]   ;;  %s5377_s1 = inlined_call_operand.hbm [shape: bf16[20,128], index: 1, kind: input, shape index: {}]   ;;  %s5378_s2 = inlined_call_operand.hbm [shape: bf16[3,32,512], index: 2, kind: input, shape index: {}]   ;;  %s5379_s3 = inlined_call_operand.hbm [shape: f32[3,1,512], index: 3, kind: input, shape index: {}]   ;;  %s5380_s4 = inlined_call_operand.hbm [shape: bf16[3,512,256], index: 4, kind: input, shape index: {}]   ;;  %s5381_s5 = inlined_call_operand.vmem [shape: f32[3,1,256], index: 5, kind: input, shape index: {}]   ;;  %s5382_s6 = inlined_call_operand.hbm [shape: bf16[256,256], index: 6, kind: input, shape index: {}]   ;;  %s5383_s7 = inlined_call_operand.hbm [shape: bf16[128,256], index: 7, kind: input, shape index: {}]   ;;  %s5384_s8 = inlined_call_operand.vmem [shape: f32[1,256], index: 8, kind: input, shape index: {}]   ;;  %s5385_s9 = inlined_call_operand.hbm [shape: bf16[256,128], index: 9, kind: input, shape index: {}]   ;;  %s5386_s10 = inlined_call_operand.vmem [shape: f32[1,128], index: 10, kind: input, shape index: {}]   ;;  %s5387_s11 = inlined_call_operand.hbm [shape: f32[20,128], index: 11, kind: output, shape index: {0}]   ;;  %s5388_s12 = inlined_call_operand.hbm [shape: f32[16,128], index: 12, kind: output, shape index: {1}]  }
   0x1   :  { %5407 = sst [smem:[#allocation34_spill]] %s5378_s2 }
   0x2   :  { %5408 = sst [smem:[#allocation35_spill]] %s5379_s3 }
   0x3   :  { %5409 = sst [smem:[#allocation36_spill]] %s5384_s8 }
   0x4   :  { %5410 = sst [smem:[#allocation37_spill]] %s5386_s10 }
   0x5   :  { %5411 = sst [smem:[#allocation38_spill]] %s5387_s11 }
   0x6   :  { %5412 = sst [smem:[#allocation39_spill]] %s5388_s12 }
   0x7   :  { %18 = vsyncpa [#allocation3], 0 }
   0x8   :  { %20 = vsyncpa [#allocation3 + $0x1], 0 }
   0x9   :  { %21 = vsyncpa [#allocation6], 0 }
   0xa   :  { %23 = vsyncpa [#allocation6 + $0x1], 0 }
   0xb   :  { %24 = vsyncpa [#allocation9], 0 }
   0xc   :  { %25 = vsyncpa [#allocation12], 0 }
   0xd   :  { %26 = vsyncpa [#allocation15], 0 }
   0xe   :  { %27 = vsyncpa [#allocation4], 0 }
   0xf   :  { %29 = vsyncpa [#allocation4 + $0x1], 0 }
  0x10   :  { %30 = vsyncpa [#allocation18], 0 }
  0x11   :  { %32 = vsyncpa [#allocation18 + $0x1], 0  ;;  %s4866_s21 = smov 0   ;;  %s4868_s22 = smov 0  }
  0x12   :  { %s4870_s23 = smov 0   ;;  %s4872_s24 = smov 0  }
  0x13 LB: > { %5413 = sst [smem:[#allocation29_spill]] %s4762_s21  ;;  %s4887_s25 = sadd.s32 4294967295, %s4774_s24   ;;  %s4774_s24 = sphi %s4872_s24, %s5454_s24   ;;  %s4770_s23 = sphi %s4870_s23, %s5458_s23   ;;  %s4766_s22 = sphi %s4868_s22, %s5457_s22   ;;  %s4762_s21 = sphi %s4866_s21, %s5456_s21  }
  0x14   : > { %s3516_s26 = sadd.s32 4294967294, %s4774_s24   ;;  %s4891_s27 = sadd.s32 1, %s4774_s24  }
  0x15   : > { %5414 = sst [smem:[#allocation30_spill]] %s4891_s27  ;;  %s45_s28 = sadd.s32 1, %s4770_s23 }
  0x16   : > { %s42_s29 = ssub.s32 %s4774_s24, %s4891_s27  ;;  %p52_p0 = scmp.ne.s32.totalorder %s4770_s23, %s4766_s22 }
  0x17   : > { %p43_p1 = scmp.eq.s32.totalorder %s42_s29, 0  ;;  %p53_p2 = scmp.eq.s32.totalorder %s4774_s24, 0 }
  0x18   : > { %p58_p3 = scmp.ne.s32.totalorder %s4766_s22, %s4762_s21  ;;  %p5395_p4 = scmp.eq.s32.totalorder %s4887_s25, 0 }
  0x19   : > { %s4903_s30 = scalar_select %p43_p1, %s4770_s23, %s45_s28  }
  0x1a   : > { %p4905_p5 = por %p53_p2, %p52_p0  ;;  %p4911_p6 = por %p5395_p4, %p58_p3 }
  0x1b   : > { %5415 = sst [smem:[#allocation31_spill]] %s4903_s30  ;;  %p297_p7 = scmp.eq.s32.totalorder %s4887_s25, 1 }
  0x1c   : > { %s5416_s13 = scalar_select %p4905_p5, 1, 0 }
  0x1d   : > { %s5417_s14 = scalar_select %p4911_p6, 1, 0 }
  0x1e   : > { %p303_p8 = scmp.eq.s32.totalorder %s3516_s26, 1  ;;  %p3517_p9 = scmp.ge.s32.totalorder %s4774_s24, 1 }
  0x1f   : > { %p336_p10 = scmp.lt.s32.totalorder %s4774_s24, 3  ;;  %p4918_p11 = por %p297_p7, %p52_p0 }
  0x20   : > { %p4922_p12 = por %p303_p8, %p58_p3  ;;  %s4776_s18 = smov [#allocation8]  }
  0x21   : > { %s5418_s15 = scalar_select %p4918_p11, 1, 0 }
  0x22   : > { %s5420_s16 = scalar_select %p4922_p12, 1, 0 }
  0x23   : > { %5419 = sst [smem:[#allocation32_spill]] %s5418_s15  ;;  %p4926_p13 = pnand %p3517_p9, %p336_p10 }
  0x24   : > { %5421 = sst [smem:[#allocation33_spill]] %s5420_s16  ;;  %s361_s19 = sshll.u32 %s4776_s18, 4  ;;  %s362_s19 = int_to_ptr.vmem [resolvable:$true] %s361_s19 }
  0x25   : > { %s5422_s17 = scalar_select %p4926_p13, 1, 0 }
  0x26   : > { %p3951_p1 = pneg %p4926_p13  ;;  %s4777_s26 = smov [#allocation11]  }
  0x27   : > { %s390_s28 = sshll.u32 %s4777_s26, 4  ;;  %s5424_s3 = sld [smem:[#allocation35_spill]]  ;;  %s391_s28 = int_to_ptr.vmem [resolvable:$true] %s390_s28 }
  0x28   : > { %p4934_p2 = pnand %p3951_p1, %p5395_p4 }
  0x2a   : > { %p4946_p3 = pneg %p4934_p2 }
  0x2d   : > { %s4460_s27 = scalar_lea.hbm %s5424_s3, 192 }
  0x2e   : > { %p4461_p0 = scmp.ne.s32.totalorder %s5424_s3, %s4460_s27  ;;  %p4467_p9 = scmp.lt.u32.totalorder %s4460_s27, %s5424_s3 }
  0x30   : > { %p4463_p7 = pnand %p4946_p3, %p4461_p0 }
  0x32   : > { %p4464_p8 = pneg %p4463_p7 }
  0x34   : > { %p4469_p10 = pnand %p4467_p9, %p4464_p8 }
  0x36   : > { %4472 = shalt.err (!%p4469_p10)
}
  0x37   : > { %s4473_s30 = scalar_lea.vmem %s362_s19, 192  ;;  %p4481_p11 = scmp.lt.s32.totalorder %s362_s19, %s362_s19 }
  0x38   : > { %p4474_p1 = scmp.ne.s32.totalorder %s362_s19, %s4473_s30  ;;  %p4482_p6 = scmp.lt.s32.totalorder %s4473_s30, %s4473_s30 }
  0x3a   : > { %p4476_p4 = pnand %p4474_p1, %p4946_p3  ;;  %p4483_p13 = por %p4482_p6, %p4481_p11 }
  0x3c   : > { %p4477_p12 = pneg %p4476_p4 }
  0x3e   : > { %p4484_p5 = pnand %p4483_p13, %p4477_p12 }
  0x40   : > { %4487 = shalt.err (!%p4484_p5)
}
  0x41   : > { %s5401_s21 = smov 64   ;;  %s5402_s16 = smov 4  }
  0x42   : > { %3957 = dma.hbm_to_vmem [thread:$0]  (!%p4934_p2), %s5424_s3, 192, %s362_s19, [#allocation9], %s5401_s21, %s5401_s21, %s5402_s16  }
  0x43   : > { %s4488_s29 = scalar_lea.hbm %s5382_s6, 4096 }
  0x44   : > { %p4489_p4 = scmp.ne.s32.totalorder %s5382_s6, %s4488_s29  ;;  %p4495_p11 = scmp.lt.u32.totalorder %s4488_s29, %s5382_s6 }
  0x46   : > { %p4491_p5 = pnand %p4489_p4, %p4946_p3 }
  0x48   : > { %p4492_p6 = pneg %p4491_p5 }
  0x4a   : > { %p4497_p12 = pnand %p4495_p11, %p4492_p6 }
  0x4c   : > { %4500 = shalt.err (!%p4497_p12)
}
  0x4d   : > { %s4501_s11 = scalar_lea.vmem %s391_s28, 4096  ;;  %p4509_p8 = scmp.lt.s32.totalorder %s391_s28, %s391_s28 }
  0x4e   : > { %p4502_p13 = scmp.ne.s32.totalorder %s391_s28, %s4501_s11  ;;  %p4510_p9 = scmp.lt.s32.totalorder %s4501_s11, %s4501_s11 }
  0x50   : > { %p4504_p0 = pnand %p4502_p13, %p4946_p3  ;;  %p4511_p10 = por %p4510_p9, %p4509_p8 }
  0x52   : > { %p4505_p7 = pneg %p4504_p0 }
  0x54   : > { %p4512_p1 = pnand %p4511_p10, %p4505_p7 }
  0x56   : > { %4515 = shalt.err (!%p4512_p1)
}
  0x57   : > { %s5403_s15 = smov 128   ;;  %s5405_s19 = smov 8  }
  0x58   : > { %3963 = dma.hbm_to_vmem [thread:$0]  (!%p4934_p2), %s5382_s6, 4096, %s391_s28, [#allocation12], %s5403_s15, %s5403_s15, %s5405_s19  }
  0x59   : > { %s4782_s12 = smov [#allocation7]   ;;  %s5426_s2 = sld [smem:[#allocation34_spill]] }
  0x5a   : > { %s348_s27 = sshll.u32 %s4782_s12, 4  ;;  %s349_s27 = int_to_ptr.vmem [resolvable:$true] %s348_s27 }
  0x5f   : > { %s4516_s30 = scalar_lea.hbm %s5426_s2, 3072 }
  0x60   : > { %p4517_p4 = scmp.ne.s32.totalorder %s5426_s2, %s4516_s30  ;;  %p4523_p11 = scmp.lt.u32.totalorder %s4516_s30, %s5426_s2 }
  0x62   : > { %p4519_p5 = pnand %p4517_p4, %p4946_p3 }
  0x64   : > { %p4520_p6 = pneg %p4519_p5 }
  0x66   : > { %p4525_p12 = pnand %p4523_p11, %p4520_p6 }
  0x68   : > { %4528 = shalt.err (!%p4525_p12)
}
  0x69   : > { %s4529_s28 = scalar_lea.vmem %s349_s27, 3072  ;;  %p4537_p8 = scmp.lt.s32.totalorder %s349_s27, %s349_s27 }
  0x6a   : > { %p4530_p13 = scmp.ne.s32.totalorder %s349_s27, %s4529_s28  ;;  %p4538_p9 = scmp.lt.s32.totalorder %s4529_s28, %s4529_s28 }
  0x6c   : > { %p4532_p0 = pnand %p4530_p13, %p4946_p3  ;;  %p4539_p10 = por %p4538_p9, %p4537_p8 }
  0x6e   : > { %p4533_p7 = pneg %p4532_p0 }
  0x70   : > { %p4540_p1 = pnand %p4539_p10, %p4533_p7 }
  0x72   : > { %4543 = shalt.err (!%p4540_p1)
}
  0x73   : > { %s4783_s21 = smov 256   ;;  %s4784_s8 = smov 16  }
  0x74   : > { %3954 = dma.hbm_to_vmem [thread:$0]  (!%p4934_p2), %s5426_s2, 3072, %s349_s27, [#allocation6], %s4783_s21, %s4783_s21, %s4784_s8  }
  0x75   : > { %s4785_s10 = smov [#allocation10]   ;;  %s4786_s26 = smov [#allocation13]  }
  0x76   : > { %s374_s12 = sshll.u32 %s4785_s10, 4  ;;  %s403_s29 = sshll.u32 %s4786_s26, 4  ;;  %s375_s12 = int_to_ptr.vmem [resolvable:$true] %s374_s12  ;;  %s5004_s29 = int_to_ptr.vmem [resolvable:$true] %s403_s29 }
  0x77   : > { %s4544_s28 = scalar_lea.hbm %s5380_s4, 24576 }
  0x78   : > { %p4545_p4 = scmp.ne.s32.totalorder %s5380_s4, %s4544_s28  ;;  %p4551_p11 = scmp.lt.u32.totalorder %s4544_s28, %s5380_s4 }
  0x7a   : > { %p4547_p5 = pnand %p4545_p4, %p4946_p3 }
  0x7c   : > { %p4548_p6 = pneg %p4547_p5 }
  0x7e   : > { %p4553_p12 = pnand %p4551_p11, %p4548_p6 }
  0x80   : > { %4556 = shalt.err (!%p4553_p12)
}
  0x81   : > { %s4557_s21 = scalar_lea.vmem %s375_s12, 24576  ;;  %p4565_p8 = scmp.lt.s32.totalorder %s375_s12, %s375_s12 }
  0x82   : > { %p4558_p13 = scmp.ne.s32.totalorder %s375_s12, %s4557_s21  ;;  %p4566_p9 = scmp.lt.s32.totalorder %s4557_s21, %s4557_s21 }
  0x84   : > { %p4560_p0 = pnand %p4558_p13, %p4946_p3  ;;  %p4567_p10 = por %p4566_p9, %p4565_p8 }
  0x86   : > { %p4561_p7 = pneg %p4560_p0 }
  0x88   : > { %p4568_p1 = pnand %p4567_p10, %p4561_p7 }
  0x8a   : > { %4571 = shalt.err (!%p4568_p1)
}
  0x8b   : > { %s5427_s15 = smov 8   ;;  %s5428_s19 = smov 128  }
  0x8c   : > { %3960 = dma.hbm_to_vmem [thread:$0]  (!%p4934_p2), %s5380_s4, 24576, %s375_s12, [#allocation9], %s5428_s19, %s5428_s19, %s5427_s15  }
  0x8d   : > { %s4572_s30 = scalar_lea.hbm %s5383_s7, 2048 }
  0x8e   : > { %p4573_p4 = scmp.ne.s32.totalorder %s5383_s7, %s4572_s30  ;;  %p4579_p11 = scmp.lt.u32.totalorder %s4572_s30, %s5383_s7 }
  0x90   : > { %p4575_p5 = pnand %p4573_p4, %p4946_p3 }
  0x92   : > { %p4576_p6 = pneg %p4575_p5 }
  0x94   : > { %p4581_p12 = pnand %p4579_p11, %p4576_p6 }
  0x96   : > { %4584 = shalt.err (!%p4581_p12)
}
  0x97   : > { %s4585_s12 = scalar_lea.vmem %s5004_s29, 2048  ;;  %p4593_p8 = scmp.lt.s32.totalorder %s5004_s29, %s5004_s29 }
  0x98   : > { %p4586_p13 = scmp.ne.s32.totalorder %s5004_s29, %s4585_s12  ;;  %p4594_p9 = scmp.lt.s32.totalorder %s4585_s12, %s4585_s12 }
  0x9a   : > { %p4588_p0 = pnand %p4586_p13, %p4946_p3  ;;  %p4595_p10 = por %p4594_p9, %p4593_p8 }
  0x9c   : > { %p4589_p7 = pneg %p4588_p0 }
  0x9e   : > { %p4596_p1 = pnand %p4595_p10, %p4589_p7 }
  0xa0   : > { %4599 = shalt.err (!%p4596_p1)
}
  0xa1   : > { %3966 = dma.hbm_to_vmem [thread:$0]  (!%p4934_p2), %s5383_s7, 2048, %s5004_s29, [#allocation12], %s5428_s19, %s5428_s19, %s5427_s15  }
  0xa2   : > { %s4787_s16 = smov [#allocation14]   ;;  %s4600_s11 = scalar_lea.hbm %s5385_s9, 2048 }
  0xa3   : > { %s419_s10 = sshll.u32 %s4787_s16, 4  ;;  %p4601_p4 = scmp.ne.s32.totalorder %s5385_s9, %s4600_s11  ;;  %s420_s10 = int_to_ptr.vmem [resolvable:$true] %s419_s10 }
  0xa4   : > { %p4607_p11 = scmp.lt.u32.totalorder %s4600_s11, %s5385_s9 }
  0xa5   : > { %p4603_p5 = pnand %p4601_p4, %p4946_p3 }
  0xa7   : > { %p4604_p6 = pneg %p4603_p5 }
  0xa9   : > { %p4609_p12 = pnand %p4607_p11, %p4604_p6 }
  0xab   : > { %4612 = shalt.err (!%p4609_p12)
}
  0xac   : > { %s4613_s29 = scalar_lea.vmem %s420_s10, 2048  ;;  %p4621_p8 = scmp.lt.s32.totalorder %s420_s10, %s420_s10 }
  0xad   : > { %p4614_p13 = scmp.ne.s32.totalorder %s420_s10, %s4613_s29  ;;  %p4622_p9 = scmp.lt.s32.totalorder %s4613_s29, %s4613_s29 }
  0xaf   : > { %p4616_p0 = pnand %p4614_p13, %p4946_p3  ;;  %p4623_p10 = por %p4622_p9, %p4621_p8 }
  0xb1   : > { %p4617_p7 = pneg %p4616_p0 }
  0xb3   : > { %p4624_p1 = pnand %p4623_p10, %p4617_p7 }
  0xb5   : > { %4627 = shalt.err (!%p4624_p1)
}
  0xb6   : > { %s5429_s15 = smov 4   ;;  %s5430_s19 = smov 64  }
  0xb7   : > { %3969 = dma.hbm_to_vmem [thread:$0]  (!%p4934_p2), %s5385_s9, 2048, %s420_s10, [#allocation15], %s5430_s19, %s5430_s19, %s5429_s15  }
  0xb8   : > { %p3524_p4 = scmp.ge.s32.totalorder %s4774_s24, 2 }
  0xb9   : > { %p5431_p3 = scmp.ne.s32.totalorder (!%p3524_p4), %s5416_s13, 0 }
  0xba   : > { %432 = sbr.rel (%p3524_p4) target bundleno = 255 (0xff), region = 52 }
  0xc1   : > { %435 = sbr.rel (!%p5431_p3) target bundleno = 218 (0xda), region = 56 }
  0xc8   : > { %s436_s18 = sand.u32 1, %s4770_s23   ;;  %s3525_s16 = sshll.u32 %s4774_s24, 1 }
  0xc9   : > { %s3918_s20 = smul.u32 24, %s436_s18  ;;  %s442_s26 = ssub.s32 3, %s3525_s16 }
  0xca   : > { %p443_p5 = scmp.lt.s32.totalorder %s442_s26, 2  ;;  %s437_s28 = scalar_lea.sflag [#allocation3], %s436_s18 }
  0xcb   : > { %s440_s10 = scalar_lea.vmem [#allocation2], %s3918_s20 }
  0xcc   : > { %s5460_s26 = smov (!%p443_p5, %s442_s26), 2 }
  0xcd   : > { %s445_s30 = smul.u32 192, %s5460_s26 }
  0xcf   : > { %s447_s11 = ssub.s32 384, %s445_s30 }
  0xd0   : > { %448 = vsyncadd %s437_s28, %s447_s11  ;;  %p3526_p2 = scmp.ne.s32.totalorder %s445_s30, 0  ;;  %s3865_s3 = sshll.u32 %s4774_s24, 7 }
  0xd1   : > { %s451_s29 = scalar_lea.hbm %s5376_s0, %s3865_s3  ;;  %s458_s15 = sld [smem:[#allocation0]]  }
  0xd2   : > { %s466_s19 = sshll.u32 %s440_s10, 4  ;;  %s4788_s21 = smov 192   ;;  %s467_s19 = int_to_ptr.vmem [resolvable:$true] %s466_s19 }
  0xd3   : > { %473 = sst [smem:[#allocation20]] %s4788_s21  ;;  %s4789_s8 = smov 128  }
  0xd4   : > { %477 = sst [smem:[#allocation20 + $0x2]] %s5460_s26  ;;  %s4790_s16 = smov 64  }
  0xd5   : > { %475 = sst [smem:[#allocation20 + $0x1]] %s4789_s8  ;;  %s4791_s11 = smov 4  }
  0xd6   : > { %479 = sst [smem:[#allocation20 + $0x3]] %s4790_s16  ;;  %s4792_s2 = smov [#allocation19]  }
  0xd7   : > { %s3530_s18 = sshll.u32 %s458_s15, 26  ;;  %481 = sst [smem:[#allocation20 + $0x4]] %s4790_s16 }
  0xd8   : > { %s3531_s20 = sadd.s32 134217728, %s3530_s18  ;;  %483 = sst [smem:[#allocation20 + $0x5]] %s4791_s11 }
  0xd9   : > { %485 = dma.general (%p3526_p2), %s451_s29, %s445_s30, %s467_s19, %s437_s28, %s4792_s2, [#allocation20], %s3531_s20, 0  }
  0xda PF: > { %p5432_p6 = scmp.ne.s32.totalorder %s5416_s13, 0 }
  0xdb   : > { %s489_s26 = sand.u32 (%p5432_p6), 1, %s4774_s24   ;;  %s491_s10 = sand.u32 (%p5432_p6), 1, %s4770_s23  }
  0xdc   : > { %488 = sbr.rel (!%p5432_p6) target bundleno = 255 (0xff), region = 60  ;;  %s3533_s3 = sshll.u32 (%p5432_p6), %s491_s10, 3 }
  0xdd   : > { %s3534_s27 = sshll.u32 (%p5432_p6), %s4774_s24, 1  ;;  %s5094_s8 = scalar_lea.sflag (%p5432_p6), [#allocation6], %s489_s26 }
  0xde   : > { %s495_s12 = ssub.s32 (%p5432_p6), 3, %s3534_s27  ;;  %s493_s2 = scalar_lea.vmem (%p5432_p6), [#allocation5], %s3533_s3 }
  0xdf   : > { %p496_p11 = scmp.lt.s32.totalorder (%p5432_p6), %s495_s12, 2 }
  0xe3   : > { %s5462_s12 = smov (!%p496_p11, %s495_s12), 2 }
  0xe4   : > { %s5091_s15 = sshll.u32 %s5462_s12, 6 }
  0xe5   : > { %s500_s21 = ssub.s32 128, %s5091_s15 }
  0xe6   : > { %501 = vsyncadd %s5094_s8, %s500_s21  ;;  %p3536_p12 = scmp.ne.s32.totalorder %s5091_s15, 0  ;;  %s3866_s13 = sshll.u32 %s4774_s24, 7 }
  0xe7   : > { %s5102_s29 = scalar_lea.hbm %s5377_s1, %s3866_s13  ;;  %s506_s19 = sshll.u32 %s493_s2, 4  ;;  %s5104_s19 = int_to_ptr.vmem [resolvable:$true] %s506_s19 }
  0xe8   : > { %s4628_s16 = scalar_lea.hbm %s5102_s29, %s5091_s15  ;;  %s4632_s11 = scalar_lea.hbm %s5377_s1, 192 }
  0xe9   : > { %p4629_p13 = scmp.ne.s32.totalorder %s5102_s29, %s4628_s16  ;;  %p4633_p8 = scmp.lt.u32.totalorder %s5102_s29, %s5377_s1 }
  0xea   : > { %p4634_p9 = scmp.lt.u32.totalorder %s4632_s11, %s4628_s16  ;;  %p4636_p1 = scmp.lt.u32.totalorder %s4628_s16, %s5102_s29 }
  0xeb   : > { %p4630_p0 = pnand %p4629_p13, %p3536_p12 }
  0xec   : > { %p4635_p10 = por %p4634_p9, %p4633_p8 }
  0xed   : > { %p4631_p7 = pneg %p4630_p0 }
  0xee   : > { %p4637_p3 = por %p4636_p1, %p4635_p10 }
  0xf0   : > { %p4638_p5 = pnand %p4637_p3, %p4631_p7 }
  0xf2   : > { %4641 = shalt.err (!%p4638_p5)
}
  0xf3   : > { %s4642_s3 = scalar_lea.vmem %s5104_s19, %s5091_s15  ;;  %s4793_s27 = smov [#allocation5]  }
  0xf4   : > { %p4643_p2 = scmp.ne.s32.totalorder %s5104_s19, %s4642_s3  ;;  %s4646_s12 = sshll.u32 %s4793_s27, 4  ;;  %s4647_s12 = int_to_ptr.vmem [resolvable:$false] %s4646_s12 }
  0xf5   : > { %s4648_s21 = scalar_lea.vmem %s4647_s12, 256  ;;  %p4649_p13 = scmp.lt.s32.totalorder %s5104_s19, %s4647_s12 }
  0xf6   : > { %p4644_p6 = pnand %p4643_p2, %p3536_p12  ;;  %p4650_p0 = scmp.lt.s32.totalorder %s4648_s21, %s4642_s3 }
  0xf8   : > { %p4645_p11 = pneg %p4644_p6  ;;  %p4651_p8 = por %p4650_p0, %p4649_p13 }
  0xfa   : > { %p4652_p9 = pnand %p4651_p8, %p4645_p11 }
  0xfc   : > { %4655 = shalt.err (!%p4652_p9)
}
  0xfd   : > { %s4794_s2 = smov 64   ;;  %s4795_s13 = smov 4  }
  0xfe   : > { %512 = dma.hbm_to_vmem [thread:$0]  (%p3536_p12), %s5102_s29, %s5091_s15, %s5104_s19, %s5094_s8, %s4794_s2, %s4794_s2, %s4795_s13  }
  0xff PF: > { %p5433_p7 = scmp.ne.s32.totalorder %s5422_s17, 0 }
 0x100   : > { %s5134_s30 = sand.u32 (!%p5433_p7), 1, %s4766_s22   ;;  %p5434_p10 = scmp.ne.s32.totalorder (!%p5433_p7), %s5417_s14, 0 }
 0x101   : > { %518 = sbr.rel (%p5433_p7) target bundleno = 1595 (0x63b), region = 64  ;;  %s521_s16 = scalar_lea.sflag (!%p5433_p7), [#allocation3], %s5134_s30 }
 0x102   : > { %s3919_s28 = smul.u32 (!%p5433_p7), 24, %s5134_s30 }
 0x104   : > { %s5138_s18 = scalar_lea.vmem (!%p5433_p7), [#allocation2], %s3919_s28 }
 0x108   : > { %4729 = dma.done.wait (%p5434_p10), %s521_s16, 384  }
 0x109   : > { %4731 = vsyncadd (%p5434_p10), %s521_s16, 4294966912  ;;  %s529_s17 = sand.u32 1, %s4887_s25   ;;  %s3541_s15 = sshll.u32 %s5134_s30, 3 }
 0x10a   : > { %s530_s8 = scalar_lea.sflag [#allocation6], %s529_s17  ;;  %s5148_s29 = scalar_lea.vmem [#allocation5], %s3541_s15 }
 0x10b   : > { %4733 = dma.done.wait (%p5434_p10), %s530_s8, 128  }
 0x10c   : > { %4735 = vsyncadd (%p5434_p10), %s530_s8, 4294967168  ;;  %p5435_p12 = scmp.eq.s32.totalorder %s4887_s25, 0 }
 0x10e   : > { %4737 = dma.done.wait (%p5435_p12), [#allocation6], 3072   ;;  %p5436_p1 = pmov %p5435_p12 }
 0x110   : > { %4739 = vsyncadd (%p5436_p1), [#allocation6], 4294964224  ;;  %p5437_p3 = pmov %p5436_p1 }
 0x111   : > { %p5438_p5 = pmov %p5436_p1 }
 0x112   : > { %4741 = dma.done.wait (%p5437_p3), [#allocation9], 24768  }
 0x113   : > { %4743 = vsyncadd (%p5438_p5), [#allocation9], 4294942528  ;;  %p5439_p2 = pmov %p5436_p1 }
 0x114   : > { %p5440_p6 = pmov %p5436_p1 }
 0x115   : > { %4745 = dma.done.wait (%p5439_p2), [#allocation12], 6144  }
 0x116   : > { %4747 = vsyncadd (%p5440_p6), [#allocation12], 4294961152  ;;  %p5441_p11 = pmov %p5436_p1 }
 0x117   : > { %p5442_p13 = pmov %p5436_p1 }
 0x118   : > { %4749 = dma.done.wait (%p5441_p11), [#allocation15], 2048  }
 0x119   : > { %4751 = vsyncadd (%p5442_p13), [#allocation15], 4294965248  ;;  %v4796_v0 = vmov 0   ;;  %v4044_v1 = vld [vmem:[#allocation7 + $0x4] ss:$16 sps:$4 sm:$0xff]   ;;  %vm701_vm0 = vcmask 261120  }
 0x11a   : > { %737 = vmatprep.mubr.bf16.mxu0 %v4796_v0  ;;  %780 = vmatprep.mubr.bf16.mxu1 %v4796_v0  ;;  %v4046_v2 = vld [vmem:[#allocation7 + $0xc] ss:$16 sps:$4 sm:$0xff]   ;;  %v4048_v3 = vld [vmem:[#allocation7] ss:$16 sps:$4 sm:$0xff]   ;;  %v4049_v4 = vld [vmem:[#allocation7 + $0x8] ss:$16 sps:$4 sm:$0xff]  }
 0x11b   : > { %705 = vmatprep.subr.bf16.mxu0 %v4044_v1  ;;  %748 = vmatprep.subr.bf16.mxu1 %v4046_v2  ;;  %v4050_v5 = vld [vmem:[#allocation7 + $0x24] ss:$16 sps:$4 sm:$0xff]   ;;  %v4052_v6 = vld [vmem:[#allocation7 + $0x2c] ss:$16 sps:$4 sm:$0xff]   ;;  %v4054_v7 = vld [vmem:[#allocation7 + $0x20] ss:$16 sps:$4 sm:$0xff]  }
 0x11c   : > { %706 = vmatpush1.bf16.msra.mxu0 %v4048_v3  ;;  %749 = vmatpush1.bf16.msra.mxu1 %v4049_v4  ;;  %v4055_v8 = vld [vmem:[#allocation7 + $0x28] ss:$16 sps:$4 sm:$0xff]   ;;  %v4059_v10 = vld [vmem:[#allocation7 + $0x44] ss:$16 sps:$4 sm:$0xff]   ;;  %v4057_v11 = vld [vmem:[#allocation7 + $0x40] ss:$16 sps:$4 sm:$0xff]  }
 0x11d   : > { %707 = vmatprep.subr.bf16.mxu0 %v4050_v5  ;;  %750 = vmatprep.subr.bf16.mxu1 %v4052_v6  ;;  %v4056_v9 = vld [vmem:[%s5138_s18] sm:$0xff]   ;;  %v4070_v15 = vld [vmem:[#allocation10] ss:$8 sps:$4 sm:$0xff]   ;;  %s3853_s3 = sshll.u32 %s4887_s25, 4  ;;  %vm3278_vm3 = vcmask 7168   ;;  %s5443_s21 = sld [smem:[#allocation36_spill]] }
 0x11e   : > { %v4062_v12 = vld [vmem:[#allocation7 + $0x64] ss:$16 sps:$4 sm:$0xff]   ;;  %v4060_v13 = vld [vmem:[#allocation7 + $0x60] ss:$16 sps:$4 sm:$0xff]   ;;  %v4066_v14 = vld [vmem:[#allocation7 + $0x4c] ss:$16 sps:$4 sm:$0xff]  }
 0x11f   : > { %v4072_v16 = vld [vmem:[#allocation10 + $0x4] ss:$8 sps:$4 sm:$0xff]   ;;  %v4063_v17 = vld [vmem:[%s5138_s18 + $0x8] sm:$0xff]   ;;  %s5287_s13 = scalar_lea.vmem [#allocation17], %s3541_s15  ;;  %s3548_s28 = sshll.u32 %s5134_s30, 4 }
 0x120   : > { %708 = vmatpush1.bf16.msra.mxu0 %v4054_v7  ;;  %751 = vmatpush1.bf16.msra.mxu1 %v4055_v8  ;;  %v4075_v18 = vld [vmem:[#allocation10 + $0x14] ss:$8 sps:$4 sm:$0xff]   ;;  %v4069_v20 = vld [vmem:[#allocation7 + $0x6c] ss:$16 sps:$4 sm:$0xff]   ;;  %v4078_v22 = vld [vmem:[#allocation10 + $0x24] ss:$8 sps:$4 sm:$0xff]  }
 0x121   : > { %1388 = vmatprep.subr.bf16.mxu1 %v4059_v10  ;;  %1199 = vmatprep.subr.bf16.mxu0 %v4072_v16  ;;  %v4064_v19 = vld [vmem:[#allocation7 + $0x48] ss:$16 sps:$4 sm:$0xff]   ;;  %v4073_v21 = vld [vmem:[#allocation10 + $0x10] ss:$8 sps:$4 sm:$0xff]   ;;  %v4076_v24 = vld [vmem:[#allocation10 + $0x20] ss:$8 sps:$4 sm:$0xff]  }
 0x122   : > { %v4067_v23 = vld [vmem:[#allocation7 + $0x68] ss:$16 sps:$4 sm:$0xff]   ;;  %v4079_v27 = vld [vmem:[#allocation10 + $0x200] ss:$8 sps:$4 sm:$0xff]   ;;  %v4082_v28 = vld [vmem:[#allocation10 + $0x30] ss:$8 sps:$4 sm:$0xff]  }
 0x123   : > { %3559 = vmatmul.mubr.msk.bf16.vlgmr.msra.gmra.mrb[0].mxu0 %vm701_vm0, %v4056_v9  ;;  %3560 = vmatmul.mubr.msk.bf16.vlgmr.msra.gmra.mrb[0].mxu1 %vm701_vm0, %v4056_v9  ;;  %v4081_v25 = vld [vmem:[#allocation10 + $0x204] ss:$8 sps:$4 sm:$0xff]   ;;  %v4084_v26 = vld [vmem:[#allocation10 + $0x34] ss:$8 sps:$4 sm:$0xff]   ;;  %v4085_v31 = vld [vmem:[#allocation10 + $0x210] ss:$8 sps:$4 sm:$0xff]  }
 0x124   : > { %1389 = vmatpush1.bf16.msra.mxu1 %v4057_v11  ;;  %1420 = vmatprep.mubr.bf16.mxu1 %v4796_v0  ;;  %v4087_v29 = vld [vmem:[#allocation10 + $0x214] ss:$8 sps:$4 sm:$0xff]   ;;  %v4090_v30 = vld [vmem:[#allocation10 + $0x44] ss:$8 sps:$4 sm:$0xff]   ;;  %v4088_v32 = vld [vmem:[#allocation10 + $0x40] ss:$8 sps:$4 sm:$0xff]  }
 0x125   : > { %1390 = vmatprep.subr.bf16.mxu1 %v4062_v12  ;;  %1200 = vmatpush1.bf16.msra.mxu0 %v4070_v15  ;;  %v4093_v33 = vld [vmem:[#allocation10 + $0x224] ss:$8 sps:$4 sm:$0xff]   ;;  %v4096_v34 = vld [vmem:[#allocation10 + $0x54] ss:$8 sps:$4 sm:$0xff]   ;;  %v4091_v35 = vld [vmem:[#allocation10 + $0x220] ss:$8 sps:$4 sm:$0xff]  }
 0x126   : > { %1201 = vmatprep.subr.bf16.mxu0 %v4075_v18  ;;  %v4094_v36 = vld [vmem:[#allocation10 + $0x50] ss:$8 sps:$4 sm:$0xff]   ;;  %v4099_v37 = vld [vmem:[#allocation10 + $0x234] ss:$8 sps:$4 sm:$0xff]   ;;  %v4102_v38 = vld [vmem:[#allocation10 + $0x64] ss:$8 sps:$4 sm:$0xff]  }
 0x127   : > { %v4097_v39 = vld [vmem:[#allocation10 + $0x230] ss:$8 sps:$4 sm:$0xff]   ;;  %v4100_v40 = vld [vmem:[#allocation10 + $0x60] ss:$8 sps:$4 sm:$0xff]   ;;  %v4105_v41 = vld [vmem:[#allocation10 + $0x244] ss:$8 sps:$4 sm:$0xff]  }
 0x128   : > { %1391 = vmatpush1.bf16.msra.mxu1 %v4060_v13  ;;  %v4108_v42 = vld [vmem:[#allocation10 + $0x74] ss:$8 sps:$4 sm:$0xff]   ;;  %v4103_v43 = vld [vmem:[#allocation10 + $0x240] ss:$8 sps:$4 sm:$0xff]   ;;  %v4106_v44 = vld [vmem:[#allocation10 + $0x70] ss:$8 sps:$4 sm:$0xff]  }
 0x129   : > { %1431 = vmatprep.subr.bf16.mxu1 %v4066_v14  ;;  %1202 = vmatpush1.bf16.msra.mxu0 %v4073_v21  ;;  %v4111_v45 = vld [vmem:[#allocation10 + $0x254] ss:$8 sps:$4 sm:$0xff]   ;;  %v4114_v46 = vld [vmem:[#allocation10 + $0x84] ss:$8 sps:$4 sm:$0xff]   ;;  %v4109_v47 = vld [vmem:[#allocation10 + $0x250] ss:$8 sps:$4 sm:$0xff]  }
 0x12a   : > { %1203 = vmatprep.subr.bf16.mxu0 %v4078_v22  ;;  %v4112_v48 = vld [vmem:[#allocation10 + $0x80] ss:$8 sps:$4 sm:$0xff]   ;;  %v4117_v49 = vld [vmem:[#allocation10 + $0x264] ss:$8 sps:$4 sm:$0xff]   ;;  %v4120_v51 = vld [vmem:[#allocation10 + $0x94] ss:$8 sps:$4 sm:$0xff]   ;;  %v636_v22 = vlaneseq }
 0x12b   : > { %3638 = vmatmul.mubr.msk.bf16.vlgmr.msra.gmra.mrb[4].mxu1 %vm701_vm0, %v4063_v17  ;;  %v4115_v50 = vld [vmem:[#allocation10 + $0x260] ss:$8 sps:$4 sm:$0xff]   ;;  %v4118_v52 = vld [vmem:[#allocation10 + $0x90] ss:$8 sps:$4 sm:$0xff]   ;;  %v4123_v53 = vld [vmem:[#allocation10 + $0x274] ss:$8 sps:$4 sm:$0xff]  }
 0x12c   : > { %1432 = vmatpush1.bf16.msra.mxu1 %v4064_v19  ;;  %1463 = vmatprep.mubr.bf16.mxu1 %v4796_v0  ;;  %v4126_v54 = vld [vmem:[#allocation10 + $0xa4] ss:$8 sps:$4 sm:$0xff]   ;;  %v4121_v55 = vld [vmem:[#allocation10 + $0x270] ss:$8 sps:$4 sm:$0xff]   ;;  %v4124_v56 = vld [vmem:[#allocation10 + $0xa0] ss:$8 sps:$4 sm:$0xff]  }
 0x12d   : > { %1433 = vmatprep.subr.bf16.mxu1 %v4069_v20  ;;  %1204 = vmatpush1.bf16.msra.mxu0 %v4076_v24  ;;  %v4129_v57 = vld [vmem:[#allocation10 + $0x284] ss:$8 sps:$4 sm:$0xff]   ;;  %v4132_v58 = vld [vmem:[#allocation10 + $0xb4] ss:$8 sps:$4 sm:$0xff]   ;;  %v4127_v59 = vld [vmem:[#allocation10 + $0x280] ss:$8 sps:$4 sm:$0xff]  }
 0x12e   : > { %1205 = vmatprep.subr.bf16.mxu0 %v4084_v26  ;;  %v4130_v60 = vld [vmem:[#allocation10 + $0xb0] ss:$8 sps:$4 sm:$0xff]   ;;  %v4135_v61 = vld [vmem:[#allocation10 + $0x294] ss:$8 sps:$4 sm:$0xff]   ;;  %v4138_v62 = vld [vmem:[#allocation10 + $0xc4] ss:$8 sps:$4 sm:$0xff]  }
 0x12f   : > { %v4133_v63 = vld [vmem:[#allocation10 + $0x290] ss:$8 sps:$4 sm:$0xff]   ;;  %v4136_v1 = vld [vmem:[#allocation10 + $0xc0] ss:$8 sps:$4 sm:$0xff]   ;;  %v4141_v2 = vld [vmem:[#allocation10 + $0x2a4] ss:$8 sps:$4 sm:$0xff]  }
 0x130   : > { %1434 = vmatpush1.bf16.msra.mxu1 %v4067_v23  ;;  %v4144_v3 = vld [vmem:[#allocation10 + $0xd4] ss:$8 sps:$4 sm:$0xff]   ;;  %v4139_v4 = vld [vmem:[#allocation10 + $0x2a0] ss:$8 sps:$4 sm:$0xff]   ;;  %v4142_v5 = vld [vmem:[#allocation10 + $0xd0] ss:$8 sps:$4 sm:$0xff]  }
 0x131   : > { %1884 = vmatprep.subr.bf16.mxu1 %v4081_v25  ;;  %1206 = vmatpush1.bf16.msra.mxu0 %v4082_v28  ;;  %v4147_v6 = vld [vmem:[#allocation10 + $0x2b4] ss:$8 sps:$4 sm:$0xff]   ;;  %v4145_v7 = vld [vmem:[#allocation10 + $0x2b0] ss:$8 sps:$4 sm:$0xff]   ;;  %v4150_v8 = vld [vmem:[#allocation10 + $0xe4] ss:$8 sps:$4 sm:$0xff]  }
 0x132   : > { %1207 = vmatprep.subr.bf16.mxu0 %v4090_v30  ;;  %v4153_v9 = vld [vmem:[#allocation10 + $0x2c4] ss:$8 sps:$4 sm:$0xff]   ;;  %v4148_v10 = vld [vmem:[#allocation10 + $0xe0] ss:$8 sps:$4 sm:$0xff]   ;;  %v4156_v12 = vld [vmem:[#allocation10 + $0xf4] ss:$8 sps:$4 sm:$0xff]  }
 0x133   : > { %3639 = vmatmul.mubr.msk.bf16.vlgmr.msra.gmra.mrb[8].mxu1 %vm701_vm0, %v4063_v17  ;;  %v4151_v11 = vld [vmem:[#allocation10 + $0x2c0] ss:$8 sps:$4 sm:$0xff]   ;;  %v4159_v13 = vld [vmem:[#allocation10 + $0x2d4] ss:$8 sps:$4 sm:$0xff]   ;;  %v4154_v14 = vld [vmem:[#allocation10 + $0xf0] ss:$8 sps:$4 sm:$0xff]  }
 0x134   : > { %1885 = vmatpush1.bf16.msra.mxu1 %v4079_v27  ;;  %v4157_v15 = vld [vmem:[#allocation10 + $0x2d0] ss:$8 sps:$4 sm:$0xff]   ;;  %v4162_v16 = vld [vmem:[#allocation10 + $0x104] ss:$8 sps:$4 sm:$0xff]   ;;  %v4163_v17 = vld [vmem:[#allocation10 + $0x2e0] ss:$8 sps:$4 sm:$0xff]  }
 0x135   : > { %1886 = vmatprep.subr.bf16.mxu1 %v4087_v29  ;;  %1208 = vmatpush1.bf16.msra.mxu0 %v4088_v32  ;;  %v4165_v18 = vld [vmem:[#allocation10 + $0x2e4] ss:$8 sps:$4 sm:$0xff]   ;;  %v4171_v19 = vld [vmem:[#allocation10 + $0x2f4] ss:$8 sps:$4 sm:$0xff]   ;;  %v4169_v20 = vld [vmem:[#allocation10 + $0x2f0] ss:$8 sps:$4 sm:$0xff]  }
 0x136   : > { %1209 = vmatprep.subr.bf16.mxu0 %v4096_v34  ;;  %v4177_v21 = vld [vmem:[#allocation10 + $0x304] ss:$8 sps:$4 sm:$0xff]   ;;  %v5180_v23 = vshrl.u32 %v636_v22, 7  ;;  %v634_v26 = vld [vmem:[#allocation8] sm:$0xf]  ;;  %s5444_s17 = sld [smem:[#allocation37_spill]] }
 0x137   : > { %v4175_v22 = vld [vmem:[#allocation10 + $0x300] ss:$8 sps:$4 sm:$0xff]   ;;  %s600_s8 = scalar_lea.vmem [#allocation16], %s3548_s28  ;;  %s3294_s15 = scalar_lea.sflag [#allocation4], %s5134_s30 }
 0x138   : > { %1887 = vmatpush1.bf16.msra.mxu1 %v4085_v31  ;;  %v5183_v24 = vsub.s32 0, %v5180_v23  ;;  %v5186_v25 = vsub.s32 2, %v5180_v23  ;;  %v5189_v27 = vsub.s32 1, %v5180_v23  ;;  %v5192_v28 = vsub.s32 3, %v5180_v23  ;;  %s5445_s14 = sld [smem:[#allocation32_spill]] }
 0x139   : > { %1888 = vmatprep.subr.bf16.mxu1 %v4093_v33  ;;  %1210 = vmatpush1.bf16.msra.mxu0 %v4094_v36 }
 0x13a   : > { %1211 = vmatprep.subr.bf16.mxu0 %v4102_v38  ;;  %v639_v29 = vrot.slane %v634_v26, %v5183_v24  ;;  %v647_v30 = vrot.slane %v634_v26, %v5186_v25  ;;  %v643_v31 = vrot.slane %v634_v26, %v5189_v27  ;;  %v651_v32 = vrot.slane %v634_v26, %v5192_v28 }
 0x13c   : > { %1889 = vmatpush1.bf16.msra.mxu1 %v4091_v35 }
 0x13d   : > { %1890 = vmatprep.subr.bf16.mxu1 %v4099_v37  ;;  %1212 = vmatpush1.bf16.msra.mxu0 %v4100_v40 }
 0x13e   : > { %1213 = vmatprep.subr.bf16.mxu0 %v4108_v42  ;;  %p5446_p0 = scmp.ne.s32.totalorder %s5445_s14, 0 }
 0x13f   : > { %s3856_s19 = sshll.u32 (%p5446_p0), %s4887_s25, 1 }
 0x140   : > { %1891 = vmatpush1.bf16.msra.mxu1 %v4097_v39  ;;  %s3307_s20 = ssub.s32 (%p5446_p0), 3, %s3856_s19 }
 0x141   : > { %1892 = vmatprep.subr.bf16.mxu1 %v4105_v41  ;;  %1214 = vmatpush1.bf16.msra.mxu0 %v4106_v44  ;;  %p3308_p8 = scmp.lt.s32.totalorder (%p5446_p0), %s3307_s20, 2 }
 0x142   : > { %1215 = vmatprep.subr.bf16.mxu0 %v4114_v46 }
 0x144   : > { %1893 = vmatpush1.bf16.msra.mxu1 %v4103_v43  ;;  %v1318_v43 = vld [vmem:[#allocation8 + $0x4] sm:$0xf] }
 0x145   : > { %1894 = vmatprep.subr.bf16.mxu1 %v4111_v45  ;;  %1216 = vmatpush1.bf16.msra.mxu0 %v4112_v48 }
 0x146   : > { %1217 = vmatprep.subr.bf16.mxu0 %v4120_v51 }
 0x148   : > { %1895 = vmatpush1.bf16.msra.mxu1 %v4109_v47 }
 0x149   : > { %1896 = vmatprep.subr.bf16.mxu1 %v4117_v49  ;;  %1218 = vmatpush1.bf16.msra.mxu0 %v4118_v52 }
 0x14a   : > { %1219 = vmatprep.subr.bf16.mxu0 %v4126_v54 }
 0x14c   : > { %1897 = vmatpush1.bf16.msra.mxu1 %v4115_v50 }
 0x14d   : > { %1898 = vmatprep.subr.bf16.mxu1 %v4123_v53  ;;  %1220 = vmatpush1.bf16.msra.mxu0 %v4124_v56 }
 0x14e   : > { %1221 = vmatprep.subr.bf16.mxu0 %v4132_v58 }
 0x150   : > { %1899 = vmatpush1.bf16.msra.mxu1 %v4121_v55  ;;  %v1323_v55 = vrot.slane %v1318_v43, %v5183_v24 }
 0x151   : > { %1900 = vmatprep.subr.bf16.mxu1 %v4129_v57  ;;  %1222 = vmatpush1.bf16.msra.mxu0 %v4130_v60 }
 0x152   : > { %1223 = vmatprep.subr.bf16.mxu0 %v4138_v62 }
 0x154   : > { %1901 = vmatpush1.bf16.msra.mxu1 %v4127_v59  ;;  %v1327_v59 = vrot.slane %v1318_v43, %v5189_v27 }
 0x155   : > { %1902 = vmatprep.subr.bf16.mxu1 %v4135_v61  ;;  %1224 = vmatpush1.bf16.msra.mxu0 %v4136_v1 }
 0x156   : > { %1225 = vmatprep.subr.bf16.mxu0 %v4144_v3 }
 0x158   : > { %1903 = vmatpush1.bf16.msra.mxu1 %v4133_v63 }
 0x159   : > { %1904 = vmatprep.subr.bf16.mxu1 %v4141_v2  ;;  %1226 = vmatpush1.bf16.msra.mxu0 %v4142_v5  ;;  %v4160_v2 = vld [vmem:[#allocation10 + $0x100] ss:$8 sps:$4 sm:$0xff]   ;;  %v4168_v5 = vld [vmem:[#allocation10 + $0x114] ss:$8 sps:$4 sm:$0xff]  }
 0x15a   : > { %1227 = vmatprep.subr.bf16.mxu0 %v4150_v8 }
 0x15c   : > { %1905 = vmatpush1.bf16.msra.mxu1 %v4139_v4 }
 0x15d   : > { %1906 = vmatprep.subr.bf16.mxu1 %v4147_v6  ;;  %1228 = vmatpush1.bf16.msra.mxu0 %v4148_v10 }
 0x15e   : > { %1229 = vmatprep.subr.bf16.mxu0 %v4156_v12 }
 0x160   : > { %1907 = vmatpush1.bf16.msra.mxu1 %v4145_v7 }
 0x161   : > { %1908 = vmatprep.subr.bf16.mxu1 %v4153_v9  ;;  %1230 = vmatpush1.bf16.msra.mxu0 %v4154_v14 }
 0x162   : > { %1242 = vmatprep.subr.bf16.mxu0 %v4162_v16  ;;  %v1331_v16 = vrot.slane %v1318_v43, %v5186_v25 }
 0x164   : > { %1909 = vmatpush1.bf16.msra.mxu1 %v4151_v11 }
 0x165   : > { %1910 = vmatprep.subr.bf16.mxu1 %v4159_v13  ;;  %v4166_v13 = vld [vmem:[#allocation10 + $0x110] ss:$8 sps:$4 sm:$0xff]  }
 0x168   : > { %1911 = vmatpush1.bf16.msra.mxu1 %v4157_v15  ;;  %v4174_v15 = vld [vmem:[#allocation10 + $0x124] ss:$8 sps:$4 sm:$0xff]  }
 0x169   : > { %1912 = vmatprep.subr.bf16.mxu1 %v4165_v18  ;;  %v1335_v18 = vrot.slane %v1318_v43, %v5192_v28  ;;  %v4189_v43 = vld [vmem:[#allocation10 + $0x324] ss:$8 sps:$4 sm:$0xff]  }
 0x16c   : > { %1913 = vmatpush1.bf16.msra.mxu1 %v4163_v17 }
 0x16d   : > { %1914 = vmatprep.subr.bf16.mxu1 %v4171_v19 }
 0x170   : > { %1915 = vmatpush1.bf16.msra.mxu1 %v4169_v20 }
 0x171   : > { %1927 = vmatprep.subr.bf16.mxu1 %v4177_v21  ;;  %v4172_v21 = vld [vmem:[#allocation10 + $0x120] ss:$8 sps:$4 sm:$0xff]  }
 0x1f6   : > { %v739_v33 = vpop.f32.mrb[0].mxu0  ;;  %v782_v34 = vpop.f32.mrb[0].mxu1 }
 0x1f7   : > { %v740_v35 = vadd.f32 %v739_v33, %v639_v29  ;;  %v741_v36 = vpop.f32.mrb[1].mxu0  ;;  %v783_v37 = vadd.f32 %v782_v34, %v647_v30  ;;  %v784_v38 = vpop.f32.mrb[1].mxu1 }
 0x1f8   : > { %v742_v39 = vadd.f32 %v741_v36, %v643_v31  ;;  %v743_v40 = vpop.f32.mrb[2].mxu0  ;;  %v785_v41 = vadd.f32 %v784_v38, %v651_v32  ;;  %v786_v42 = vpop.f32.mrb[2].mxu1  ;;  %v4178_v38 = vld [vmem:[#allocation10 + $0x130] ss:$8 sps:$4 sm:$0xff]  }
 0x1f9   : > { %v744_v44 = vadd.f32 %v743_v40, %v639_v29  ;;  %v745_v45 = vpop.f32.mrb[3].mxu0  ;;  %v793_v46 = vmax.f32 %v783_v37, 0.0  ;;  %v787_v47 = vadd.f32 %v786_v42, %v647_v30  ;;  %v788_v48 = vpop.f32.mrb[3].mxu1  ;;  %v791_v52 = vmax.f32 %v740_v35, 0.0  ;;  %v4180_v29 = vld [vmem:[#allocation10 + $0x134] ss:$8 sps:$4 sm:$0xff]  }
 0x1fa   : > { %v746_v49 = vadd.f32 %v745_v45, %v643_v31  ;;  %v794_v50 = vmax.f32 %v785_v41, 0.0  ;;  %v789_v51 = vadd.f32 %v788_v48, %v651_v32  ;;  %v792_v56 = vmax.f32 %v742_v39, 0.0  ;;  %v4183_v30 = vld [vmem:[#allocation10 + $0x314] ss:$8 sps:$4 sm:$0xff]   ;;  %v4181_v39 = vld [vmem:[#allocation10 + $0x310] ss:$8 sps:$4 sm:$0xff]  }
 0x1fb   : > { %v795_v53 = vmax.f32 %v744_v44, 0.0  ;;  %v797_v54 = vmax.f32 %v787_v47, 0.0  ;;  %v4186_v42 = vld [vmem:[#allocation10 + $0x144] ss:$8 sps:$4 sm:$0xff]   ;;  %v4184_v47 = vld [vmem:[#allocation10 + $0x140] ss:$8 sps:$4 sm:$0xff]  }
 0x1fc   : > { %v796_v57 = vmax.f32 %v746_v49, 0.0  ;;  %v798_v58 = vmax.f32 %v789_v51, 0.0  ;;  %v4187_v48 = vld [vmem:[#allocation10 + $0x320] ss:$8 sps:$4 sm:$0xff]   ;;  %v4195_v51 = vld [vmem:[#allocation10 + $0x334] ss:$8 sps:$4 sm:$0xff]  }
 0x1fd   : > { %v799_v60 = vpack.c.bf16 %v795_v53, %v791_v52  ;;  %v5200_v61 = vpack.c.bf16 %v797_v54, %v793_v46  ;;  %v4190_v52 = vld [vmem:[#allocation10 + $0x150] ss:$8 sps:$4 sm:$0xff]   ;;  %v4198_v54 = vld [vmem:[#allocation10 + $0x164] ss:$8 sps:$4 sm:$0xff]  }
 0x1fe   : > { %v800_v62 = vpack.c.bf16 %v796_v57, %v792_v56  ;;  %v802_v63 = vpack.c.bf16 %v798_v58, %v794_v50  ;;  %v1422_v1 = vpop.f32.mrb[4].mxu1  ;;  %v4192_v50 = vld [vmem:[#allocation10 + $0x154] ss:$8 sps:$4 sm:$0xff]   ;;  %v4193_v53 = vld [vmem:[#allocation10 + $0x330] ss:$8 sps:$4 sm:$0xff]  }
 0x1ff   : > { %v1423_v3 = vadd.f32 %v1422_v1, %v1323_v55  ;;  %v1424_v4 = vpop.f32.mrb[5].mxu1  ;;  %v4196_v56 = vld [vmem:[#allocation10 + $0x160] ss:$8 sps:$4 sm:$0xff]   ;;  %v4204_v58 = vld [vmem:[#allocation10 + $0x174] ss:$8 sps:$4 sm:$0xff]  }
 0x200   : > { %v1425_v6 = vadd.f32 %v1424_v4, %v1327_v59  ;;  %1231 = vmatprep.mubr.bf16.mxu0 %v800_v62  ;;  %v1426_v7 = vpop.f32.mrb[6].mxu1  ;;  %v4199_v57 = vld [vmem:[#allocation10 + $0x340] ss:$8 sps:$4 sm:$0xff]   ;;  %v4205_v62 = vld [vmem:[#allocation10 + $0x350] ss:$8 sps:$4 sm:$0xff]  }
 0x201   : > { %v1474_v8 = vmax.f32 %v1423_v3, 0.0  ;;  %v1427_v9 = vadd.f32 %v1426_v7, %v1323_v55  ;;  %1232 = vmatmul.mubr.bf16.vlgmr.msra.gmra.mrb[4].mxu0 %v799_v60  ;;  %v1428_v10 = vpop.f32.mrb[7].mxu1  ;;  %v4201_v55 = vld [vmem:[#allocation10 + $0x344] ss:$8 sps:$4 sm:$0xff]   ;;  %v4202_v60 = vld [vmem:[#allocation10 + $0x170] ss:$8 sps:$4 sm:$0xff]  }
 0x202   : > { %v1475_v11 = vmax.f32 %v1425_v6, 0.0  ;;  %1243 = vmatpush1.bf16.msra.mxu0 %v4160_v2  ;;  %v1429_v12 = vadd.f32 %v1428_v10, %v1327_v59  ;;  %1274 = vmatprep.mubr.bf16.mxu0 %v802_v63  ;;  %v4207_v59 = vld [vmem:[#allocation10 + $0x354] ss:$8 sps:$4 sm:$0xff]   ;;  %v4210_v63 = vld [vmem:[#allocation10 + $0x184] ss:$8 sps:$4 sm:$0xff]  }
 0x203   : > { %v1478_v14 = vmax.f32 %v1427_v9, 0.0  ;;  %1244 = vmatprep.subr.bf16.mxu0 %v4168_v5  ;;  %v4213_v1 = vld [vmem:[#allocation10 + $0x364] ss:$8 sps:$4 sm:$0xff]   ;;  %v4208_v2 = vld [vmem:[#allocation10 + $0x180] ss:$8 sps:$4 sm:$0xff]  }
 0x204   : > { %v1479_v17 = vmax.f32 %v1429_v12, 0.0  ;;  %v4211_v3 = vld [vmem:[#allocation10 + $0x360] ss:$8 sps:$4 sm:$0xff]   ;;  %v4216_v4 = vld [vmem:[#allocation10 + $0x194] ss:$8 sps:$4 sm:$0xff]  }
 0x205   : > { %v1482_v19 = vpack.c.bf16 %v1478_v14, %v1474_v8  ;;  %v4219_v5 = vld [vmem:[#allocation10 + $0x374] ss:$8 sps:$4 sm:$0xff]   ;;  %v4214_v6 = vld [vmem:[#allocation10 + $0x190] ss:$8 sps:$4 sm:$0xff]   ;;  %v4222_v8 = vld [vmem:[#allocation10 + $0x1a4] ss:$8 sps:$4 sm:$0xff]  }
 0x206   : > { %v1483_v20 = vpack.c.bf16 %v1479_v17, %v1475_v11  ;;  %1245 = vmatpush1.bf16.msra.mxu0 %v4166_v13  ;;  %v1465_v26 = vpop.f32.mrb[8].mxu1  ;;  %v4217_v7 = vld [vmem:[#allocation10 + $0x370] ss:$8 sps:$4 sm:$0xff]   ;;  %v4225_v9 = vld [vmem:[#allocation10 + $0x384] ss:$8 sps:$4 sm:$0xff]  }
 0x207   : > { %1246 = vmatprep.subr.bf16.mxu0 %v4174_v15  ;;  %v1466_v31 = vadd.f32 %v1465_v26, %v1331_v16  ;;  %v1467_v32 = vpop.f32.mrb[9].mxu1  ;;  %v4220_v10 = vld [vmem:[#allocation10 + $0x1a0] ss:$8 sps:$4 sm:$0xff]   ;;  %v4228_v12 = vld [vmem:[#allocation10 + $0x1b4] ss:$8 sps:$4 sm:$0xff]  }
 0x208   : > { %1916 = vmatprep.mubr.bf16.mxu1 %v1483_v20  ;;  %v1468_v33 = vadd.f32 %v1467_v32, %v1335_v18  ;;  %v1469_v34 = vpop.f32.mrb[10].mxu1  ;;  %v4223_v11 = vld [vmem:[#allocation10 + $0x380] ss:$8 sps:$4 sm:$0xff]   ;;  %v4231_v13 = vld [vmem:[#allocation10 + $0x394] ss:$8 sps:$4 sm:$0xff]  }
 0x209   : > { %1917 = vmatmul.mubr.bf16.vlgmr.msra.gmra.mrb[12].mxu1 %v1482_v19  ;;  %v1476_v35 = vmax.f32 %v1466_v31, 0.0  ;;  %v1470_v36 = vadd.f32 %v1469_v34, %v1331_v16  ;;  %v1471_v37 = vpop.f32.mrb[11].mxu1  ;;  %v4226_v14 = vld [vmem:[#allocation10 + $0x1b0] ss:$8 sps:$4 sm:$0xff]   ;;  %v4234_v16 = vld [vmem:[#allocation10 + $0x1c4] ss:$8 sps:$4 sm:$0xff]  }
 0x20a   : > { %1247 = vmatpush1.bf16.msra.mxu0 %v4172_v21  ;;  %1928 = vmatpush1.bf16.msra.mxu1 %v4175_v22  ;;  %v1477_v40 = vmax.f32 %v1468_v33, 0.0  ;;  %v1472_v41 = vadd.f32 %v1471_v37, %v1335_v18  ;;  %v4229_v15 = vld [vmem:[#allocation10 + $0x390] ss:$8 sps:$4 sm:$0xff]   ;;  %v4237_v17 = vld [vmem:[#allocation10 + $0x3a4] ss:$8 sps:$4 sm:$0xff]  }
 0x20b   : > { %1248 = vmatprep.subr.bf16.mxu0 %v4180_v29  ;;  %1929 = vmatprep.subr.bf16.mxu1 %v4183_v30  ;;  %v1480_v44 = vmax.f32 %v1470_v36, 0.0  ;;  %v4232_v18 = vld [vmem:[#allocation10 + $0x1c0] ss:$8 sps:$4 sm:$0xff]   ;;  %v4240_v20 = vld [vmem:[#allocation10 + $0x1d4] ss:$8 sps:$4 sm:$0xff]  }
 0x20c   : > { %v1481_v45 = vmax.f32 %v1472_v41, 0.0  ;;  %v4235_v19 = vld [vmem:[#allocation10 + $0x3a0] ss:$8 sps:$4 sm:$0xff]   ;;  %v4243_v21 = vld [vmem:[#allocation10 + $0x3b4] ss:$8 sps:$4 sm:$0xff]  }
 0x20d   : > { %v5204_v46 = vpack.c.bf16 %v1480_v44, %v1476_v35  ;;  %v4238_v22 = vld [vmem:[#allocation10 + $0x1d0] ss:$8 sps:$4 sm:$0xff]   ;;  %v4246_v29 = vld [vmem:[#allocation10 + $0x1e4] ss:$8 sps:$4 sm:$0xff]   ;;  %v4244_v31 = vld [vmem:[#allocation10 + $0x1e0] ss:$8 sps:$4 sm:$0xff]  }
 0x20e   : > { %1249 = vmatpush1.bf16.msra.mxu0 %v4178_v38  ;;  %1930 = vmatpush1.bf16.msra.mxu1 %v4181_v39  ;;  %v1485_v49 = vpack.c.bf16 %v1481_v45, %v1477_v40  ;;  %v4241_v26 = vld [vmem:[#allocation10 + $0x3b0] ss:$8 sps:$4 sm:$0xff]   ;;  %v4249_v30 = vld [vmem:[#allocation10 + $0x3c4] ss:$8 sps:$4 sm:$0xff]   ;;  %v4247_v32 = vld [vmem:[#allocation10 + $0x3c0] ss:$8 sps:$4 sm:$0xff]  }
 0x20f   : > { %1250 = vmatprep.subr.bf16.mxu0 %v4186_v42  ;;  %1931 = vmatprep.subr.bf16.mxu1 %v4189_v43  ;;  %v4252_v33 = vld [vmem:[#allocation10 + $0x1f4] ss:$8 sps:$4 sm:$0xff]   ;;  %v4250_v35 = vld [vmem:[#allocation10 + $0x1f0] ss:$8 sps:$4 sm:$0xff]   ;;  %v4258_v37 = vld [vmem:[#allocation10 + $0x3e4] ss:$8 sps:$4 sm:$0xff]  }
 0x210   : > { %1959 = vmatprep.mubr.bf16.mxu1 %v1485_v49  ;;  %v4255_v34 = vld [vmem:[#allocation10 + $0x3d4] ss:$8 sps:$4 sm:$0xff]   ;;  %v4253_v36 = vld [vmem:[#allocation10 + $0x3d0] ss:$8 sps:$4 sm:$0xff]   ;;  %v4256_v39 = vld [vmem:[#allocation10 + $0x3e0] ss:$8 sps:$4 sm:$0xff]  }
 0x211   : > { %v4261_v38 = vld [vmem:[#allocation7 + $0x84] ss:$16 sps:$4 sm:$0xff]   ;;  %v4259_v40 = vld [vmem:[#allocation7 + $0x80] ss:$16 sps:$4 sm:$0xff]   ;;  %v4271_v45 = vld [vmem:[#allocation7 + $0x8c] ss:$16 sps:$4 sm:$0xff]  }
 0x212   : > { %1251 = vmatpush1.bf16.msra.mxu0 %v4184_v47  ;;  %1932 = vmatpush1.bf16.msra.mxu1 %v4187_v48  ;;  %v4264_v41 = vld [vmem:[#allocation10 + $0x3f4] ss:$8 sps:$4 sm:$0xff]   ;;  %v4267_v42 = vld [vmem:[#allocation7 + $0xa4] ss:$16 sps:$4 sm:$0xff]   ;;  %v4274_v49 = vld [vmem:[#allocation7 + $0xac] ss:$16 sps:$4 sm:$0xff]  }
 0x213   : > { %1252 = vmatprep.subr.bf16.mxu0 %v4192_v50  ;;  %1933 = vmatprep.subr.bf16.mxu1 %v4195_v51  ;;  %v4262_v43 = vld [vmem:[#allocation10 + $0x3f0] ss:$8 sps:$4 sm:$0xff]   ;;  %v4265_v44 = vld [vmem:[#allocation7 + $0xa0] ss:$16 sps:$4 sm:$0xff]   ;;  %v4269_v48 = vld [vmem:[#allocation7 + $0x88] ss:$16 sps:$4 sm:$0xff]  }
 0x214   : > { %v4268_v47 = vld [vmem:[%s5138_s18 + $0x10] sm:$0xff]  }
 0x215   : > { %v4277_v50 = vld [vmem:[#allocation10 + $0x404] ss:$8 sps:$4 sm:$0xff]   ;;  %v4275_v51 = vld [vmem:[#allocation10 + $0x400] ss:$8 sps:$4 sm:$0xff]  }
 0x216   : > { %1253 = vmatpush1.bf16.msra.mxu0 %v4190_v52  ;;  %1934 = vmatpush1.bf16.msra.mxu1 %v4193_v53  ;;  %v4280_v52 = vld [vmem:[#allocation10 + $0x414] ss:$8 sps:$4 sm:$0xff]   ;;  %v4278_v53 = vld [vmem:[#allocation10 + $0x410] ss:$8 sps:$4 sm:$0xff]  }
 0x217   : > { %1254 = vmatprep.subr.bf16.mxu0 %v4198_v54  ;;  %1935 = vmatprep.subr.bf16.mxu1 %v4201_v55  ;;  %v4281_v54 = vld [vmem:[#allocation10 + $0x420] ss:$8 sps:$4 sm:$0xff]   ;;  %v4286_v55 = vld [vmem:[#allocation10 + $0x434] ss:$8 sps:$4 sm:$0xff]  }
 0x21a   : > { %1255 = vmatpush1.bf16.msra.mxu0 %v4196_v56  ;;  %1936 = vmatpush1.bf16.msra.mxu1 %v4199_v57  ;;  %v4284_v56 = vld [vmem:[#allocation10 + $0x430] ss:$8 sps:$4 sm:$0xff]   ;;  %v4289_v57 = vld [vmem:[#allocation10 + $0x444] ss:$8 sps:$4 sm:$0xff]  }
 0x21b   : > { %1256 = vmatprep.subr.bf16.mxu0 %v4204_v58  ;;  %1937 = vmatprep.subr.bf16.mxu1 %v4207_v59  ;;  %v4292_v58 = vld [vmem:[#allocation10 + $0x454] ss:$8 sps:$4 sm:$0xff]   ;;  %v4290_v59 = vld [vmem:[#allocation10 + $0x450] ss:$8 sps:$4 sm:$0xff]  }
 0x21e   : > { %1257 = vmatpush1.bf16.msra.mxu0 %v4202_v60  ;;  %1938 = vmatpush1.bf16.msra.mxu1 %v4205_v62  ;;  %v4295_v60 = vld [vmem:[#allocation10 + $0x464] ss:$8 sps:$4 sm:$0xff]   ;;  %v4293_v62 = vld [vmem:[#allocation10 + $0x460] ss:$8 sps:$4 sm:$0xff]  }
 0x21f   : > { %1258 = vmatprep.subr.bf16.mxu0 %v4210_v63  ;;  %1939 = vmatprep.subr.bf16.mxu1 %v4213_v1  ;;  %v4298_v63 = vld [vmem:[#allocation10 + $0x474] ss:$8 sps:$4 sm:$0xff]   ;;  %v4296_v1 = vld [vmem:[#allocation10 + $0x470] ss:$8 sps:$4 sm:$0xff]  }
 0x222   : > { %1259 = vmatpush1.bf16.msra.mxu0 %v4208_v2  ;;  %1940 = vmatpush1.bf16.msra.mxu1 %v4211_v3  ;;  %v4301_v2 = vld [vmem:[#allocation10 + $0x484] ss:$8 sps:$4 sm:$0xff]   ;;  %v4299_v3 = vld [vmem:[#allocation10 + $0x480] ss:$8 sps:$4 sm:$0xff]  }
 0x223   : > { %1260 = vmatprep.subr.bf16.mxu0 %v4216_v4  ;;  %1941 = vmatprep.subr.bf16.mxu1 %v4219_v5  ;;  %v4304_v4 = vld [vmem:[#allocation10 + $0x494] ss:$8 sps:$4 sm:$0xff]   ;;  %v4302_v5 = vld [vmem:[#allocation10 + $0x490] ss:$8 sps:$4 sm:$0xff]  }
 0x226   : > { %1261 = vmatpush1.bf16.msra.mxu0 %v4214_v6  ;;  %1942 = vmatpush1.bf16.msra.mxu1 %v4217_v7  ;;  %v4307_v6 = vld [vmem:[#allocation10 + $0x4a4] ss:$8 sps:$4 sm:$0xff]   ;;  %v4305_v7 = vld [vmem:[#allocation10 + $0x4a0] ss:$8 sps:$4 sm:$0xff]  }
 0x227   : > { %1262 = vmatprep.subr.bf16.mxu0 %v4222_v8  ;;  %1943 = vmatprep.subr.bf16.mxu1 %v4225_v9  ;;  %v4310_v8 = vld [vmem:[#allocation10 + $0x4b4] ss:$8 sps:$4 sm:$0xff]   ;;  %v4308_v9 = vld [vmem:[#allocation10 + $0x4b0] ss:$8 sps:$4 sm:$0xff]  }
 0x22a   : > { %1263 = vmatpush1.bf16.msra.mxu0 %v4220_v10  ;;  %1944 = vmatpush1.bf16.msra.mxu1 %v4223_v11  ;;  %v4313_v10 = vld [vmem:[#allocation10 + $0x4c4] ss:$8 sps:$4 sm:$0xff]   ;;  %v4311_v11 = vld [vmem:[#allocation10 + $0x4c0] ss:$8 sps:$4 sm:$0xff]  }
 0x22b   : > { %1264 = vmatprep.subr.bf16.mxu0 %v4228_v12  ;;  %1945 = vmatprep.subr.bf16.mxu1 %v4231_v13  ;;  %v4316_v12 = vld [vmem:[#allocation10 + $0x4d4] ss:$8 sps:$4 sm:$0xff]   ;;  %v4314_v13 = vld [vmem:[#allocation10 + $0x4d0] ss:$8 sps:$4 sm:$0xff]  }
 0x22e   : > { %1265 = vmatpush1.bf16.msra.mxu0 %v4226_v14  ;;  %1946 = vmatpush1.bf16.msra.mxu1 %v4229_v15  ;;  %v4319_v14 = vld [vmem:[#allocation10 + $0x4e4] ss:$8 sps:$4 sm:$0xff]   ;;  %v4317_v15 = vld [vmem:[#allocation10 + $0x4e0] ss:$8 sps:$4 sm:$0xff]  }
 0x22f   : > { %1266 = vmatprep.subr.bf16.mxu0 %v4234_v16  ;;  %1947 = vmatprep.subr.bf16.mxu1 %v4237_v17  ;;  %v4322_v16 = vld [vmem:[#allocation10 + $0x4f4] ss:$8 sps:$4 sm:$0xff]   ;;  %v4320_v17 = vld [vmem:[#allocation10 + $0x4f0] ss:$8 sps:$4 sm:$0xff]  }
 0x232   : > { %1267 = vmatpush1.bf16.msra.mxu0 %v4232_v18  ;;  %1948 = vmatpush1.bf16.msra.mxu1 %v4235_v19  ;;  %v4325_v18 = vld [vmem:[#allocation10 + $0x504] ss:$8 sps:$4 sm:$0xff]   ;;  %v867_v19 = vld [vmem:[%s5381_s5] sm:$0x3] }
 0x233   : > { %1268 = vmatprep.subr.bf16.mxu0 %v4240_v20  ;;  %1949 = vmatprep.subr.bf16.mxu1 %v4243_v21  ;;  %v872_v20 = vrot.slane %v867_v19, %v5183_v24  ;;  %v876_v21 = vrot.slane %v867_v19, %v5189_v27 }
 0x236   : > { %1269 = vmatpush1.bf16.msra.mxu0 %v4238_v22  ;;  %1950 = vmatpush1.bf16.msra.mxu1 %v4241_v26 }
 0x237   : > { %1270 = vmatprep.subr.bf16.mxu0 %v4246_v29  ;;  %1951 = vmatprep.subr.bf16.mxu1 %v4249_v30 }
 0x23a   : > { %1271 = vmatpush1.bf16.msra.mxu0 %v4244_v31  ;;  %1952 = vmatpush1.bf16.msra.mxu1 %v4247_v32  ;;  %v3640_v32 = vld [vmem:[%s5381_s5 + $0x2] sm:$0x3] }
 0x23b   : > { %1272 = vmatprep.subr.bf16.mxu0 %v4252_v33  ;;  %1953 = vmatprep.subr.bf16.mxu1 %v4255_v34  ;;  %v2003_v33 = vld [vmem:[#allocation8 + $0x8] sm:$0xf] }
 0x23e   : > { %1273 = vmatpush1.bf16.msra.mxu0 %v4250_v35  ;;  %1954 = vmatpush1.bf16.msra.mxu1 %v4253_v36 }
 0x23f   : > { %1955 = vmatprep.subr.bf16.mxu1 %v4258_v37  ;;  %2073 = vmatprep.subr.bf16.mxu0 %v4261_v38 }
 0x241   : > { %1275 = vmatmul.mubr.bf16.vlgmr.msra.gmra.mrb[4].mxu0 %v5200_v61  ;;  %v4272_v61 = vld [vmem:[#allocation7 + $0xa8] ss:$16 sps:$4 sm:$0xff]  }
 0x242   : > { %1956 = vmatpush1.bf16.msra.mxu1 %v4256_v39  ;;  %2074 = vmatpush1.bf16.msra.mxu0 %v4259_v40  ;;  %v1557_v40 = vrot.slane %v3640_v32, %v5183_v24 }
 0x243   : > { %1957 = vmatprep.subr.bf16.mxu1 %v4264_v41  ;;  %2075 = vmatprep.subr.bf16.mxu0 %v4267_v42  ;;  %v2008_v41 = vrot.slane %v2003_v33, %v5183_v24 }
 0x244   : > { %2105 = vmatprep.mubr.bf16.mxu0 %v4796_v0 }
 0x246   : > { %1958 = vmatpush1.bf16.msra.mxu1 %v4262_v43  ;;  %2076 = vmatpush1.bf16.msra.mxu0 %v4265_v44  ;;  %v1561_v44 = vrot.slane %v3640_v32, %v5189_v27 }
 0x247   : > { %2116 = vmatprep.subr.bf16.mxu0 %v4271_v45  ;;  %v2012_v45 = vrot.slane %v2003_v33, %v5189_v27 }
 0x249   : > { %1960 = vmatmul.mubr.bf16.vlgmr.msra.gmra.mrb[12].mxu1 %v5204_v46  ;;  %3718 = vmatmul.mubr.msk.bf16.vlgmr.msra.gmra.mrb[8].mxu0 %vm701_vm0, %v4268_v47  ;;  %v4283_v46 = vld [vmem:[#allocation10 + $0x424] ss:$8 sps:$4 sm:$0xff]  }
 0x24a   : > { %2117 = vmatpush1.bf16.msra.mxu0 %v4269_v48  ;;  %2148 = vmatprep.mubr.bf16.mxu0 %v4796_v0 }
 0x24b   : > { %2118 = vmatprep.subr.bf16.mxu0 %v4274_v49  ;;  %2853 = vmatprep.mubr.bf16.mxu1 %v4796_v0  ;;  %v4287_v0 = vld [vmem:[#allocation10 + $0x440] ss:$8 sps:$4 sm:$0xff]  }
 0x24e   : > { %2119 = vmatpush1.bf16.msra.mxu0 %v4272_v61 }
 0x24f   : > { %2569 = vmatprep.subr.bf16.mxu0 %v4277_v50 }
 0x251   : > { %3719 = vmatmul.mubr.msk.bf16.vlgmr.msra.gmra.mrb[12].mxu0 %vm701_vm0, %v4268_v47 }
 0x252   : > { %2570 = vmatpush1.bf16.msra.mxu0 %v4275_v51 }
 0x253   : > { %2571 = vmatprep.subr.bf16.mxu0 %v4280_v52 }
 0x256   : > { %2572 = vmatpush1.bf16.msra.mxu0 %v4278_v53 }
 0x257   : > { %2573 = vmatprep.subr.bf16.mxu0 %v4283_v46 }
 0x25a   : > { %2574 = vmatpush1.bf16.msra.mxu0 %v4281_v54 }
 0x25b   : > { %2575 = vmatprep.subr.bf16.mxu0 %v4286_v55 }
 0x25e   : > { %2576 = vmatpush1.bf16.msra.mxu0 %v4284_v56 }
 0x25f   : > { %2577 = vmatprep.subr.bf16.mxu0 %v4289_v57 }
 0x262   : > { %2578 = vmatpush1.bf16.msra.mxu0 %v4287_v0 }
 0x263   : > { %2579 = vmatprep.subr.bf16.mxu0 %v4292_v58  ;;  %v2016_v58 = vrot.slane %v2003_v33, %v5186_v25 }
 0x266   : > { %2580 = vmatpush1.bf16.msra.mxu0 %v4290_v59 }
 0x267   : > { %2581 = vmatprep.subr.bf16.mxu0 %v4295_v60 }
 0x26a   : > { %2582 = vmatpush1.bf16.msra.mxu0 %v4293_v62 }
 0x26b   : > { %2583 = vmatprep.subr.bf16.mxu0 %v4298_v63 }
 0x26e   : > { %2584 = vmatpush1.bf16.msra.mxu0 %v4296_v1 }
 0x26f   : > { %2585 = vmatprep.subr.bf16.mxu0 %v4301_v2  ;;  %v2020_v2 = vrot.slane %v2003_v33, %v5192_v28 }
 0x272   : > { %2586 = vmatpush1.bf16.msra.mxu0 %v4299_v3 }
 0x273   : > { %2587 = vmatprep.subr.bf16.mxu0 %v4304_v4 }
 0x276   : > { %2588 = vmatpush1.bf16.msra.mxu0 %v4302_v5 }
 0x277   : > { %2589 = vmatprep.subr.bf16.mxu0 %v4307_v6 }
 0x27a   : > { %2590 = vmatpush1.bf16.msra.mxu0 %v4305_v7 }
 0x27b   : > { %2591 = vmatprep.subr.bf16.mxu0 %v4310_v8 }
 0x27e   : > { %2592 = vmatpush1.bf16.msra.mxu0 %v4308_v9 }
 0x27f   : > { %2593 = vmatprep.subr.bf16.mxu0 %v4313_v10 }
 0x282   : > { %2594 = vmatpush1.bf16.msra.mxu0 %v4311_v11 }
 0x283   : > { %2595 = vmatprep.subr.bf16.mxu0 %v4316_v12 }
 0x286   : > { %2596 = vmatpush1.bf16.msra.mxu0 %v4314_v13 }
 0x287   : > { %2597 = vmatprep.subr.bf16.mxu0 %v4319_v14 }
 0x28a   : > { %2598 = vmatpush1.bf16.msra.mxu0 %v4317_v15 }
 0x28b   : > { %2599 = vmatprep.subr.bf16.mxu0 %v4322_v16 }
 0x28e   : > { %2600 = vmatpush1.bf16.msra.mxu0 %v4320_v17 }
 0x28f   : > { %2612 = vmatprep.subr.bf16.mxu0 %v4325_v18  ;;  %v4323_v18 = vld [vmem:[#allocation10 + $0x500] ss:$8 sps:$4 sm:$0xff]  }
 0x314   : > { %v1276_v22 = vpop.f32.mrb[4].mxu0 }
 0x315   : > { %v3890_v26 = vadd.f32 %v1276_v22, %v872_v20  ;;  %v1278_v29 = vpop.f32.mrb[5].mxu0 }
 0x316   : > { %v3891_v30 = vadd.f32 %v1278_v29, %v876_v21  ;;  %v1280_v31 = vpop.f32.mrb[6].mxu0 }
 0x317   : > { %v5222_v34 = vmax.f32 %v3890_v26, 0.0  ;;  %v3892_v35 = vadd.f32 %v1280_v31, %v872_v20  ;;  %v1282_v36 = vpop.f32.mrb[7].mxu0  ;;  %v4328_v20 = vld [vmem:[#allocation10 + $0x514] ss:$8 sps:$4 sm:$0xff]  }
 0x318   : > { %v5224_v37 = vmax.f32 %v3891_v30, 0.0  ;;  %v3893_v38 = vadd.f32 %v1282_v36, %v876_v21 }
 0x319   : > { %v5226_v39 = vmax.f32 %v3892_v35, 0.0  ;;  %v1289_v42 = vmul.f32 %v5222_v34, %v5222_v34  ;;  %v4326_v35 = vld [vmem:[#allocation10 + $0x510] ss:$8 sps:$4 sm:$0xff]  }
 0x31a   : > { %v5232_v43 = vmax.f32 %v3893_v38, 0.0  ;;  %v1290_v47 = vmul.f32 %v5224_v37, %v5224_v37 }
 0x31b   : > { %v1291_v48 = vmul.f32 %v5226_v39, %v5226_v39 }
 0x31c   : > { %v1292_v49 = vmul.f32 %v5232_v43, %v5232_v43  ;;  %v1961_v61 = vpop.f32.mrb[12].mxu1  ;;  %v2107_v50 = vpop.f32.mrb[8].mxu0  ;;  %v1293_v51 = vadd.f32 %v1290_v47, %v1289_v42 }
 0x31d   : > { %v3894_v52 = vadd.f32 %v1961_v61, %v1557_v40  ;;  %v2108_v53 = vadd.f32 %v2107_v50, %v2008_v41  ;;  %v1963_v46 = vpop.f32.mrb[13].mxu1  ;;  %v2109_v54 = vpop.f32.mrb[9].mxu0  ;;  %v4337_v61 = vld [vmem:[#allocation10 + $0x544] ss:$8 sps:$4 sm:$0xff]   ;;  %v4335_v50 = vld [vmem:[#allocation10 + $0x540] ss:$8 sps:$4 sm:$0xff]  }
 0x31e   : > { %v3895_v55 = vadd.f32 %v1963_v46, %v1561_v44  ;;  %v2110_v56 = vadd.f32 %v2109_v54, %v2012_v45  ;;  %v2111_v57 = vpop.f32.mrb[10].mxu0  ;;  %1294 = vadd.xlane.f32.xlu0 %v1293_v51  ;;  %v1965_v0 = vpop.f32.mrb[14].mxu1  ;;  %v1296_v6 = vadd.f32 %v1292_v49, %v1291_v48  ;;  %v4334_v48 = vld [vmem:[#allocation10 + $0x534] ss:$8 sps:$4 sm:$0xff]   ;;  %v4332_v49 = vld [vmem:[#allocation10 + $0x530] ss:$8 sps:$4 sm:$0xff]  }
 0x31f   : > { %v5243_v59 = vmax.f32 %v3894_v52, 0.0  ;;  %v2112_v60 = vadd.f32 %v2111_v57, %v2008_v41  ;;  %v2113_v62 = vpop.f32.mrb[11].mxu0  ;;  %v3896_v63 = vadd.f32 %v1965_v0, %v1557_v40  ;;  %v1967_v1 = vpop.f32.mrb[15].mxu1  ;;  %v2159_v7 = vmax.f32 %v2108_v53, 0.0  ;;  %v4331_v40 = vld [vmem:[#allocation10 + $0x524] ss:$8 sps:$4 sm:$0xff]  }
 0x320   : > { %v5246_v3 = vmax.f32 %v3895_v55, 0.0  ;;  %v2114_v4 = vadd.f32 %v2113_v62, %v2012_v45  ;;  %v3897_v5 = vadd.f32 %v1967_v1, %v1561_v44  ;;  %v2160_v10 = vmax.f32 %v2110_v56, 0.0  ;;  %v4329_v45 = vld [vmem:[#allocation10 + $0x520] ss:$8 sps:$4 sm:$0xff]   ;;  %v4340_v51 = vld [vmem:[#allocation10 + $0x554] ss:$8 sps:$4 sm:$0xff]  }
 0x321   : > { %v2163_v8 = vmax.f32 %v2112_v60, 0.0  ;;  %v5248_v9 = vmax.f32 %v3896_v63, 0.0  ;;  %v1974_v25 = vmul.f32 %v5243_v59, %v5243_v59  ;;  %v4338_v52 = vld [vmem:[#allocation10 + $0x550] ss:$8 sps:$4 sm:$0xff]   ;;  %v4343_v53 = vld [vmem:[#allocation10 + $0x564] ss:$8 sps:$4 sm:$0xff]  }
 0x322   : > { %v2164_v11 = vmax.f32 %v2114_v4, 0.0  ;;  %v5252_v12 = vmax.f32 %v3897_v5, 0.0  ;;  %1297 = vadd.xlane.f32.xlu0 %v1296_v6  ;;  %v1975_v28 = vmul.f32 %v5246_v3, %v5246_v3  ;;  %v4341_v46 = vld [vmem:[#allocation10 + $0x560] ss:$8 sps:$4 sm:$0xff]   ;;  %v4373_v55 = vld [vmem:[#allocation13 + $0x4] ss:$8 sps:$4 sm:$0xff]  }
 0x323   : > { %v2167_v13 = vpack.c.bf16 %v2163_v8, %v2159_v7  ;;  %v1976_v14 = vmul.f32 %v5248_v9, %v5248_v9  ;;  %v4371_v54 = vld [vmem:[#allocation13] ss:$8 sps:$4 sm:$0xff]   ;;  %v4346_v56 = vld [vmem:[#allocation10 + $0x574] ss:$8 sps:$4 sm:$0xff]   ;;  %2821 = vmatprep.subr.bf16.mxu1 %v4373_v55  ;;  %v4374_v0 = vld [vmem:[#allocation13 + $0x10] ss:$8 sps:$4 sm:$0xff]  }
 0x324   : > { %v2168_v15 = vpack.c.bf16 %v2164_v11, %v2160_v10  ;;  %v1977_v16 = vmul.f32 %v5252_v12, %v5252_v12  ;;  %v1978_v17 = vadd.f32 %v1975_v28, %v1974_v25  ;;  %v2150_v19 = vpop.f32.mrb[12].mxu0  ;;  %v4376_v57 = vld [vmem:[#allocation13 + $0x14] ss:$8 sps:$4 sm:$0xff]   ;;  %2822 = vmatpush1.bf16.msra.mxu1 %v4371_v54  ;;  %v4379_v60 = vld [vmem:[#allocation13 + $0x24] ss:$8 sps:$4 sm:$0xff]  }
 0x325   : > { %v2151_v21 = vadd.f32 %v2150_v19, %v2016_v58  ;;  %v2152_v22 = vpop.f32.mrb[13].mxu0  ;;  %2823 = vmatprep.subr.bf16.mxu1 %v4376_v57  ;;  %v4349_v62 = vld [vmem:[#allocation10 + $0x584] ss:$8 sps:$4 sm:$0xff]   ;;  %v4377_v63 = vld [vmem:[#allocation13 + $0x20] ss:$8 sps:$4 sm:$0xff]  }
 0x326   : > { %1979 = vadd.xlane.f32.xlu1 %v1978_v17  ;;  %2601 = vmatprep.mubr.bf16.mxu0 %v2168_v15  ;;  %v1981_v26 = vadd.f32 %v1977_v16, %v1976_v14  ;;  %v2153_v29 = vadd.f32 %v2152_v22, %v2020_v2  ;;  %v2154_v30 = vpop.f32.mrb[14].mxu0  ;;  %v4347_v1 = vld [vmem:[#allocation10 + $0x580] ss:$8 sps:$4 sm:$0xff]   ;;  %v4352_v4 = vld [vmem:[#allocation10 + $0x594] ss:$8 sps:$4 sm:$0xff]  }
 0x327   : > { %2602 = vmatmul.mubr.bf16.vlgmr.msra.gmra.mrb[16].mxu0 %v2167_v13  ;;  %v2161_v31 = vmax.f32 %v2151_v21, 0.0  ;;  %v2155_v32 = vadd.f32 %v2154_v30, %v2016_v58  ;;  %v2156_v33 = vpop.f32.mrb[15].mxu0  ;;  %v4344_v58 = vld [vmem:[#allocation10 + $0x570] ss:$8 sps:$4 sm:$0xff]   ;;  %v4385_v7 = vld [vmem:[#allocation13 + $0x44] ss:$8 sps:$4 sm:$0xff]  }
 0x328   : > { %2613 = vmatpush1.bf16.msra.mxu0 %v4323_v18  ;;  %v2162_v36 = vmax.f32 %v2153_v29, 0.0  ;;  %v2157_v38 = vadd.f32 %v2156_v33, %v2020_v2  ;;  %2824 = vmatpush1.bf16.msra.mxu1 %v4374_v0  ;;  %v4382_v2 = vld [vmem:[#allocation13 + $0x34] ss:$8 sps:$4 sm:$0xff]   ;;  %v4380_v5 = vld [vmem:[#allocation13 + $0x30] ss:$8 sps:$4 sm:$0xff]  }
 0x329   : > { %2614 = vmatprep.subr.bf16.mxu0 %v4328_v20  ;;  %v2165_v41 = vmax.f32 %v2155_v32, 0.0  ;;  %2825 = vmatprep.subr.bf16.mxu1 %v4379_v60  ;;  %v4350_v6 = vld [vmem:[#allocation10 + $0x590] ss:$8 sps:$4 sm:$0xff]   ;;  %v4355_v8 = vld [vmem:[#allocation10 + $0x5a4] ss:$8 sps:$4 sm:$0xff]  }
 0x32a   : > { %1982 = vadd.xlane.f32.xlu1 %v1981_v26  ;;  %v2166_v42 = vmax.f32 %v2157_v38, 0.0  ;;  %v4383_v25 = vld [vmem:[#allocation13 + $0x40] ss:$8 sps:$4 sm:$0xff]   ;;  %v4388_v11 = vld [vmem:[#allocation13 + $0x54] ss:$8 sps:$4 sm:$0xff]  }
 0x32b   : > { %v5260_v44 = vpack.c.bf16 %v2165_v41, %v2161_v31  ;;  %v4353_v10 = vld [vmem:[#allocation10 + $0x5a0] ss:$8 sps:$4 sm:$0xff]   ;;  %v4358_v28 = vld [vmem:[#allocation10 + $0x5b4] ss:$8 sps:$4 sm:$0xff]   ;;  %v4386_v13 = vld [vmem:[#allocation13 + $0x50] ss:$8 sps:$4 sm:$0xff]  }
 0x32c   : > { %2615 = vmatpush1.bf16.msra.mxu0 %v4326_v35  ;;  %v2170_v47 = vpack.c.bf16 %v2166_v42, %v2162_v36  ;;  %2826 = vmatpush1.bf16.msra.mxu1 %v4377_v63  ;;  %v4356_v14 = vld [vmem:[#allocation10 + $0x5b0] ss:$8 sps:$4 sm:$0xff]   ;;  %v4391_v15 = vld [vmem:[#allocation13 + $0x64] ss:$8 sps:$4 sm:$0xff]   ;;  %v4389_v17 = vld [vmem:[#allocation13 + $0x60] ss:$8 sps:$4 sm:$0xff]  }
 0x32d   : > { %2616 = vmatprep.subr.bf16.mxu0 %v4331_v40  ;;  %2827 = vmatprep.subr.bf16.mxu1 %v4382_v2  ;;  %v4361_v16 = vld [vmem:[#allocation10 + $0x5c4] ss:$8 sps:$4 sm:$0xff]   ;;  %v4359_v18 = vld [vmem:[#allocation10 + $0x5c0] ss:$8 sps:$4 sm:$0xff]   ;;  %v4394_v19 = vld [vmem:[#allocation13 + $0x74] ss:$8 sps:$4 sm:$0xff]  }
 0x32e   : > { %2644 = vmatprep.mubr.bf16.mxu0 %v2170_v47  ;;  %v4364_v20 = vld [vmem:[#allocation10 + $0x5d4] ss:$8 sps:$4 sm:$0xff]   ;;  %v4392_v21 = vld [vmem:[#allocation13 + $0x70] ss:$8 sps:$4 sm:$0xff]   ;;  %v4397_v26 = vld [vmem:[#allocation11 + $0x4] ss:$8 sps:$4 sm:$0xff]  }
 0x32f   : > { %v4362_v22 = vld [vmem:[#allocation10 + $0x5d0] ss:$8 sps:$4 sm:$0xff]   ;;  %v4367_v29 = vld [vmem:[#allocation10 + $0x5e4] ss:$8 sps:$4 sm:$0xff]   ;;  %v4395_v31 = vld [vmem:[#allocation11] ss:$8 sps:$4 sm:$0xff]  }
 0x330   : > { %2617 = vmatpush1.bf16.msra.mxu0 %v4329_v45  ;;  %2828 = vmatpush1.bf16.msra.mxu1 %v4380_v5  ;;  %v4398_v30 = vld [vmem:[%s5148_s29] sm:$0xff]   ;;  %v4401_v33 = vld [vmem:[#allocation11 + $0x14] ss:$8 sps:$4 sm:$0xff]   ;;  %s3299_s29 = scalar_lea.sflag [#allocation18], %s5134_s30 }
 0x331   : > { %2618 = vmatprep.subr.bf16.mxu0 %v4334_v48  ;;  %2829 = vmatprep.subr.bf16.mxu1 %v4385_v7  ;;  %v4365_v32 = vld [vmem:[#allocation10 + $0x5e0] ss:$8 sps:$4 sm:$0xff]   ;;  %v4370_v35 = vld [vmem:[#allocation10 + $0x5f4] ss:$8 sps:$4 sm:$0xff]   ;;  %v4399_v36 = vld [vmem:[#allocation11 + $0x10] ss:$8 sps:$4 sm:$0xff]  }
 0x332   : > { %v4368_v38 = vld [vmem:[#allocation10 + $0x5f0] ss:$8 sps:$4 sm:$0xff]   ;;  %v4404_v40 = vld [vmem:[#allocation11 + $0x24] ss:$8 sps:$4 sm:$0xff]   ;;  %v4402_v41 = vld [vmem:[#allocation11 + $0x20] ss:$8 sps:$4 sm:$0xff]  }
 0x333   : > { %v4407_v42 = vld [vmem:[#allocation11 + $0x34] ss:$8 sps:$4 sm:$0xff]   ;;  %v4405_v45 = vld [vmem:[#allocation11 + $0x30] ss:$8 sps:$4 sm:$0xff]   ;;  %v4410_v47 = vld [vmem:[#allocation11 + $0x44] ss:$8 sps:$4 sm:$0xff]  }
 0x334   : > { %2619 = vmatpush1.bf16.msra.mxu0 %v4332_v49  ;;  %2830 = vmatpush1.bf16.msra.mxu1 %v4383_v25  ;;  %v4408_v48 = vld [vmem:[#allocation11 + $0x40] ss:$8 sps:$4 sm:$0xff]   ;;  %v4413_v49 = vld [vmem:[#allocation11 + $0x54] ss:$8 sps:$4 sm:$0xff]   ;;  %v4423_v55 = vld [vmem:[#allocation11 + $0x90] ss:$8 sps:$4 sm:$0xff]  }
 0x335   : > { %2620 = vmatprep.subr.bf16.mxu0 %v4337_v61  ;;  %2831 = vmatprep.subr.bf16.mxu1 %v4388_v11  ;;  %v4411_v61 = vld [vmem:[#allocation11 + $0x50] ss:$8 sps:$4 sm:$0xff]   ;;  %v4425_v54 = vld [vmem:[#allocation11 + $0x94] ss:$8 sps:$4 sm:$0xff]   ;;  %v4426_v57 = vld [vmem:[#allocation11 + $0xa0] ss:$8 sps:$4 sm:$0xff]  }
 0x336   : > { %v4431_v0 = vld [vmem:[#allocation11 + $0xb4] ss:$8 sps:$4 sm:$0xff]   ;;  %v4434_v60 = vld [vmem:[#allocation11 + $0xc4] ss:$8 sps:$4 sm:$0xff]   ;;  %v3720_v7 = vld [vmem:[%s5381_s5 + $0x4] sm:$0x3] }
 0x337   : > { %v4437_v63 = vld [vmem:[#allocation11 + $0xd4] ss:$8 sps:$4 sm:$0xff]   ;;  %v4440_v2 = vld [vmem:[#allocation11 + $0xe4] ss:$8 sps:$4 sm:$0xff]   ;;  %v2246_v25 = vrot.slane %v3720_v7, %v5189_v27 }
 0x338   : > { %2621 = vmatpush1.bf16.msra.mxu0 %v4335_v50  ;;  %2832 = vmatpush1.bf16.msra.mxu1 %v4386_v13  ;;  %v4416_v50 = vld [vmem:[#allocation11 + $0x64] ss:$8 sps:$4 sm:$0xff]   ;;  %v4443_v5 = vld [vmem:[#allocation11 + $0xf4] ss:$8 sps:$4 sm:$0xff]  }
 0x339   : > { %2622 = vmatprep.subr.bf16.mxu0 %v4340_v51  ;;  %2833 = vmatprep.subr.bf16.mxu1 %v4391_v15  ;;  %v4414_v51 = vld [vmem:[#allocation11 + $0x60] ss:$8 sps:$4 sm:$0xff]  }
 0x33c   : > { %2623 = vmatpush1.bf16.msra.mxu0 %v4338_v52  ;;  %2834 = vmatpush1.bf16.msra.mxu1 %v4389_v17  ;;  %v4419_v52 = vld [vmem:[#allocation11 + $0x74] ss:$8 sps:$4 sm:$0xff]  }
 0x33d   : > { %2624 = vmatprep.subr.bf16.mxu0 %v4343_v53  ;;  %2835 = vmatprep.subr.bf16.mxu1 %v4394_v19  ;;  %v4417_v53 = vld [vmem:[#allocation11 + $0x70] ss:$8 sps:$4 sm:$0xff]  }
 0x340   : > { %2625 = vmatpush1.bf16.msra.mxu0 %v4341_v46  ;;  %2836 = vmatpush1.bf16.msra.mxu1 %v4392_v21  ;;  %v4420_v46 = vld [vmem:[#allocation11 + $0x80] ss:$8 sps:$4 sm:$0xff]  }
 0x341   : > { %2626 = vmatprep.subr.bf16.mxu0 %v4346_v56  ;;  %3024 = vmatprep.subr.bf16.mxu1 %v4397_v26  ;;  %v4428_v56 = vld [vmem:[#allocation11 + $0xa4] ss:$8 sps:$4 sm:$0xff]  }
 0x343   : > { %2854 = vmatmul.mubr.bf16.vlgmr.msra.gmra.mrb[16].mxu1 %v4398_v30 }
 0x344   : > { %2627 = vmatpush1.bf16.msra.mxu0 %v4344_v58  ;;  %3025 = vmatpush1.bf16.msra.mxu1 %v4395_v31  ;;  %v4429_v58 = vld [vmem:[#allocation11 + $0xb0] ss:$8 sps:$4 sm:$0xff]  }
 0x345   : > { %2628 = vmatprep.subr.bf16.mxu0 %v4349_v62  ;;  %3026 = vmatprep.subr.bf16.mxu1 %v4401_v33  ;;  %v4432_v62 = vld [vmem:[#allocation11 + $0xc0] ss:$8 sps:$4 sm:$0xff]  }
 0x348   : > { %2629 = vmatpush1.bf16.msra.mxu0 %v4347_v1  ;;  %3027 = vmatpush1.bf16.msra.mxu1 %v4399_v36  ;;  %v4435_v1 = vld [vmem:[#allocation11 + $0xd0] ss:$8 sps:$4 sm:$0xff]  }
 0x349   : > { %2630 = vmatprep.subr.bf16.mxu0 %v4352_v4  ;;  %3028 = vmatprep.subr.bf16.mxu1 %v4404_v40  ;;  %v4438_v4 = vld [vmem:[#allocation11 + $0xe0] ss:$8 sps:$4 sm:$0xff]  }
 0x34c   : > { %2631 = vmatpush1.bf16.msra.mxu0 %v4350_v6  ;;  %3029 = vmatpush1.bf16.msra.mxu1 %v4402_v41  ;;  %v4441_v6 = vld [vmem:[#allocation11 + $0xf0] ss:$8 sps:$4 sm:$0xff]  }
 0x34d   : > { %2632 = vmatprep.subr.bf16.mxu0 %v4355_v8  ;;  %3030 = vmatprep.subr.bf16.mxu1 %v4407_v42  ;;  %v2242_v8 = vrot.slane %v3720_v7, %v5183_v24 }
 0x350   : > { %2633 = vmatpush1.bf16.msra.mxu0 %v4353_v10  ;;  %3031 = vmatpush1.bf16.msra.mxu1 %v4405_v45 }
 0x351   : > { %2634 = vmatprep.subr.bf16.mxu0 %v4358_v28  ;;  %3032 = vmatprep.subr.bf16.mxu1 %v4410_v47  ;;  %v4445_v47 = vld [vmem:[#allocation14] sm:$0xff]  }
 0x354   : > { %2635 = vmatpush1.bf16.msra.mxu0 %v4356_v14  ;;  %3033 = vmatpush1.bf16.msra.mxu1 %v4408_v48  ;;  %v4446_v48 = vld [vmem:[#allocation14 + $0x48] sm:$0xff]  }
 0x355   : > { %2636 = vmatprep.subr.bf16.mxu0 %v4361_v16  ;;  %3034 = vmatprep.subr.bf16.mxu1 %v4413_v49  ;;  %v4452_v49 = vld [vmem:[#allocation14 + $0x60] sm:$0xff]  }
 0x358   : > { %2637 = vmatpush1.bf16.msra.mxu0 %v4359_v18  ;;  %3035 = vmatpush1.bf16.msra.mxu1 %v4411_v61  ;;  %v4453_v61 = vld [vmem:[#allocation14 + $0x20] sm:$0xff]  }
 0x359   : > { %2638 = vmatprep.subr.bf16.mxu0 %v4364_v20  ;;  %3036 = vmatprep.subr.bf16.mxu1 %v4416_v50  ;;  %v4454_v50 = vld [vmem:[#allocation14 + $0x68] sm:$0xff]  }
 0x35c   : > { %2639 = vmatpush1.bf16.msra.mxu0 %v4362_v22  ;;  %3037 = vmatpush1.bf16.msra.mxu1 %v4414_v51  ;;  %v4455_v51 = vld [vmem:[#allocation14 + $0x28] sm:$0xff]  }
 0x35d   : > { %2640 = vmatprep.subr.bf16.mxu0 %v4367_v29  ;;  %3038 = vmatprep.subr.bf16.mxu1 %v4419_v52  ;;  %v4456_v52 = vld [vmem:[#allocation14 + $0x70] sm:$0xff]  }
 0x360   : > { %2641 = vmatpush1.bf16.msra.mxu0 %v4365_v32  ;;  %3039 = vmatpush1.bf16.msra.mxu1 %v4417_v53  ;;  %v4457_v53 = vld [vmem:[#allocation14 + $0x30] sm:$0xff]  }
 0x361   : > { %2642 = vmatprep.subr.bf16.mxu0 %v4370_v35 }
 0x364   : > { %2643 = vmatpush1.bf16.msra.mxu0 %v4368_v38 }
 0x367   : > { %2645 = vmatmul.mubr.bf16.vlgmr.msra.gmra.mrb[16].mxu0 %v5260_v44  ;;  %v4422_v44 = vld [vmem:[#allocation11 + $0x84] ss:$8 sps:$4 sm:$0xff]  }
 0x368   : > { %3040 = vmatprep.subr.bf16.mxu1 %v4422_v44  ;;  %v4458_v44 = vld [vmem:[#allocation14 + $0x78] sm:$0xff]  }
 0x369   : > { %3041 = vmatpush1.bf16.msra.mxu1 %v4420_v46  ;;  %v4459_v46 = vld [vmem:[#allocation14 + $0x38] sm:$0xff]  }
 0x36a   : > { %3042 = vmatprep.subr.bf16.mxu1 %v4425_v54 }
 0x36d   : > { %3043 = vmatpush1.bf16.msra.mxu1 %v4423_v55 }
 0x36e   : > { %3044 = vmatprep.subr.bf16.mxu1 %v4428_v56 }
 0x371   : > { %3045 = vmatpush1.bf16.msra.mxu1 %v4426_v57 }
 0x372   : > { %3046 = vmatprep.subr.bf16.mxu1 %v4431_v0 }
 0x375   : > { %3047 = vmatpush1.bf16.msra.mxu1 %v4429_v58 }
 0x376   : > { %3048 = vmatprep.subr.bf16.mxu1 %v4434_v60 }
 0x379   : > { %3049 = vmatpush1.bf16.msra.mxu1 %v4432_v62  ;;  %v3271_v62 = vstv %s3853_s3 }
 0x37a   : > { %3050 = vmatprep.subr.bf16.mxu1 %v4437_v63  ;;  %v3270_v63 = vadd.s32 8, %v5180_v23 }
 0x37d   : > { %3051 = vmatpush1.bf16.msra.mxu1 %v4435_v1 }
 0x37e   : > { %3052 = vmatprep.subr.bf16.mxu1 %v4440_v2 }
 0x381   : > { %3053 = vmatpush1.bf16.msra.mxu1 %v4438_v4 }
 0x382   : > { %3054 = vmatprep.subr.bf16.mxu1 %v4443_v5  ;;  %v3272_v5 = vadd.s32 %v3271_v62, %v5180_v23 }
 0x384   : > { %vm3274_vm1 = vcmp.lt.s32.totalorder %v3272_v5, 20 }
 0x385   : > { %3055 = vmatpush1.bf16.msra.mxu1 %v4441_v6 }
 0x3ab   : > { %v1295_v55 = vpop.xlane.xlu0 %1294 }
 0x3ac   : > { %v3625_v58 = vadd.f32 -1.0, %v1295_v55 }
 0x3ae   : > { %v1301_v6 = vmax.f32 %v3625_v58, 0.0 }
 0x3af   : > { %v1298_v0 = vpop.xlane.xlu0 %1297 }
 0x3b0   : > { %v3626_v1 = vadd.f32 -1.0, %v1298_v0 }
 0x3b3   : > { %v1980_v54 = vpop.xlane.xlu1 %1979 }
 0x3b4   : > { %v3705_v57 = vadd.f32 -1.0, %v1980_v54 }
 0x3b6   : > { %v1986_v2 = vmax.f32 %v3705_v57, 0.0 }
 0x3b7   : > { %v1983_v56 = vpop.xlane.xlu1 %1982 }
 0x3b8   : > { %v3706_v60 = vadd.f32 -1.0, %v1983_v56 }
 0x3ba   : > { %v1987_v7 = vmax.f32 %v3706_v60, 0.0 }
 0x43a   : > { %v2646_v10 = vpop.f32.mrb[16].mxu0 }
 0x43b   : > { %v3898_v11 = vadd.f32 %v2646_v10, %v2242_v8  ;;  %v2648_v28 = vpop.f32.mrb[17].mxu0  ;;  %v3273_v10 = vadd.s32 %v3271_v62, %v3270_v63 }
 0x43c   : > { %v3899_v13 = vadd.f32 %v2648_v28, %v2246_v25  ;;  %v2650_v14 = vpop.f32.mrb[18].mxu0  ;;  %v1988_v28 = vadd.f32 %v1986_v2, %v1301_v6 }
 0x43d   : > { %v2655_v15 = vmax.f32 %v3898_v11, 0.0  ;;  %v3900_v16 = vadd.f32 %v2650_v14, %v2242_v8  ;;  %v2652_v17 = vpop.f32.mrb[19].mxu0  ;;  %v1302_v11 = vmax.f32 %v3626_v1, 0.0  ;;  %vm3275_vm2 = vcmp.lt.s32.totalorder %v3273_v10, 20 }
 0x43e   : > { %v2656_v18 = vmax.f32 %v3899_v13, 0.0  ;;  %v3901_v19 = vadd.f32 %v2652_v17, %v2246_v25 }
 0x43f   : > { %v2659_v20 = vmul.f32 %v2655_v15, %v2655_v15  ;;  %v2675_v21 = vsub.f32 %v2655_v15, %v5243_v59  ;;  %v2657_v22 = vmax.f32 %v3900_v16, 0.0  ;;  %v1989_v15 = vadd.f32 %v1987_v7, %v1302_v11 }
 0x440   : > { %v2660_v26 = vmul.f32 %v2656_v18, %v2656_v18  ;;  %v2676_v29 = vsub.f32 %v2656_v18, %v5246_v3  ;;  %v2658_v30 = vmax.f32 %v3901_v19, 0.0 }
 0x441   : > { %v2661_v31 = vmul.f32 %v2657_v22, %v2657_v22  ;;  %v2677_v32 = vsub.f32 %v2657_v22, %v5248_v9  ;;  %v2679_v38 = vsub.f32 %v2675_v21, %v5222_v34  ;;  %v4444_v9 = vld [vmem:[#allocation14 + $0x40] sm:$0xff]   ;;  %v4448_v34 = vld [vmem:[#allocation14 + $0x50] sm:$0xff]  }
 0x442   : > { %v2662_v33 = vmul.f32 %v2658_v30, %v2658_v30  ;;  %v2678_v35 = vsub.f32 %v2658_v30, %v5252_v12  ;;  %v2663_v36 = vadd.f32 %v2660_v26, %v2659_v20  ;;  %v2680_v41 = vsub.f32 %v2676_v29, %v5224_v37  ;;  %3868 = vmatprep.subr.bf16.mxu1 %v4444_v9  ;;  %v4447_v12 = vld [vmem:[#allocation14 + $0x8] sm:$0xff]   ;;  %v4450_v37 = vld [vmem:[#allocation14 + $0x58] sm:$0xff]   ;;  %v3067_v26 = vld [vmem:[%s5443_s21] sm:$0x3] }
 0x443   : > { %v2681_v40 = vsub.f32 %v2677_v32, %v5226_v39  ;;  %v4449_v39 = vld [vmem:[#allocation14 + $0x10] sm:$0xff]   ;;  %v3072_v29 = vrot.slane %v3067_v26, %v5183_v24  ;;  %v3076_v30 = vrot.slane %v3067_v26, %v5189_v27 }
 0x444   : > { %v2682_v59 = vsub.f32 %v2678_v35, %v5232_v43  ;;  %2664 = vadd.xlane.f32.xlu0 %v2663_v36  ;;  %v2666_v42 = vadd.f32 %v2662_v33, %v2661_v31  ;;  %v4451_v43 = vld [vmem:[#allocation14 + $0x18] sm:$0xff]  }
 0x445   : > { %v2683_v45 = vpack.c.bf16 %v2681_v40, %v2679_v38 }
 0x446   : > { %2667 = vadd.xlane.f32.xlu1 %v2666_v42  ;;  %v2684_v3 = vpack.c.bf16 %v2682_v59, %v2680_v41 }
 0x448   : > { %3056 = vmatprep.mubr.bf16.mxu1 %v2684_v3 }
 0x449   : > { %3057 = vmatmul.mubr.bf16.vlgmr.msra.gmra.mrb[16].mxu1 %v2683_v45 }
 0x44a   : > { %3869 = vmatpush3.bf16.msra.mxu1 %v4445_v47 }
 0x44b   : > { %3870 = vmatprep.subr.bf16.mxu1 %v4446_v48 }
 0x44e   : > { %3871 = vmatpush3.bf16.msra.mxu1 %v4447_v12 }
 0x44f   : > { %3872 = vmatprep.subr.bf16.mxu1 %v4448_v34 }
 0x452   : > { %3873 = vmatpush3.bf16.msra.mxu1 %v4449_v39 }
 0x453   : > { %3874 = vmatprep.subr.bf16.mxu1 %v4450_v37 }
 0x456   : > { %3875 = vmatpush3.bf16.msra.mxu1 %v4451_v43 }
 0x457   : > { %3876 = vmatprep.subr.bf16.mxu1 %v4452_v49 }
 0x45a   : > { %3877 = vmatpush3.bf16.msra.mxu1 %v4453_v61  ;;  %v3836_v61 = vld [vmem:[%s5444_s17] ss:$0 sm:$0xff] }
 0x45b   : > { %3878 = vmatprep.subr.bf16.mxu1 %v4454_v50 }
 0x45e   : > { %3879 = vmatpush3.bf16.msra.mxu1 %v4455_v51 }
 0x45f   : > { %3880 = vmatprep.subr.bf16.mxu1 %v4456_v52 }
 0x462   : > { %3881 = vmatpush3.bf16.msra.mxu1 %v4457_v53 }
 0x463   : > { %3882 = vmatprep.subr.bf16.mxu1 %v4458_v44 }
 0x466   : > { %3883 = vmatpush3.bf16.msra.mxu1 %v4459_v46 }
 0x4d1   : > { %v2665_v4 = vpop.xlane.xlu0 %2664 }
 0x4d2   : > { %v3785_v8 = vadd.f32 -1.0, %v2665_v4 }
 0x4d3   : > { %v2668_v25 = vpop.xlane.xlu1 %2667 }
 0x4d4   : > { %v2671_v13 = vmax.f32 %v3785_v8, 0.0  ;;  %v3786_v14 = vadd.f32 -1.0, %v2668_v25 }
 0x4d6   : > { %v2673_v16 = vadd.f32 %v2671_v13, %v1988_v28  ;;  %v2672_v17 = vmax.f32 %v3786_v14, 0.0 }
 0x4d8   : > { %v2674_v18 = vadd.f32 %v2672_v17, %v1989_v15  ;;  %v3276_v19 = vsel %vm3274_vm1, %v2673_v16, 0.0 }
 0x4d9   : > { %v3279_v21 = vsel %vm3278_vm3, %v3276_v19, 0.0 }
 0x4da   : > { %v3277_v20 = vsel %vm3275_vm2, %v2674_v18, 0.0 }
 0x4db   : > { %v3280_v23 = vsel %vm3278_vm3, %v3277_v20, 0.0 }
 0x4dc   : > { %v3281_v22 = vadd.f32 %v3280_v23, %v3279_v21 }
 0x4de   : > { %3282 = vadd.xlane.f32.xlu0 %v3281_v22 }
 0x51c   : > { %v3058_v31 = vpop.f32.mrb[16].mxu1 }
 0x51d   : > { %v3079_v32 = vadd.f32 %v3072_v29, %v3058_v31  ;;  %v3060_v33 = vpop.f32.mrb[17].mxu1 }
 0x51e   : > { %v3080_v35 = vadd.f32 %v3076_v30, %v3060_v33  ;;  %v3062_v36 = vpop.f32.mrb[18].mxu1 }
 0x51f   : > { %v3081_v38 = vadd.f32 %v3072_v29, %v3062_v36  ;;  %v3064_v40 = vpop.f32.mrb[19].mxu1  ;;  %v3083_v59 = vmax.f32 %v3079_v32, 0.0 }
 0x520   : > { %v3082_v41 = vadd.f32 %v3076_v30, %v3064_v40  ;;  %v3084_v45 = vmax.f32 %v3080_v35, 0.0 }
 0x521   : > { %v3085_v42 = vmax.f32 %v3081_v38, 0.0 }
 0x522   : > { %v3086_v3 = vmax.f32 %v3082_v41, 0.0 }
 0x523   : > { %v3087_v9 = vpack.c.bf16 %v3085_v42, %v3083_v59 }
 0x524   : > { %v3088_v47 = vpack.c.bf16 %v3086_v3, %v3084_v45 }
 0x526   : > { %3256 = vmatprep.mubr.bf16.mxu1 %v3088_v47 }
 0x527   : > { %3257 = vmatmul.mubr.bf16.vlgmr.msra.gmra.mrb[20].mxu1 %v3087_v9 }
 0x56b   : > { %v3283_v24 = vpop.xlane.xlu0 %3282 }
 0x56c   : > { %v3284_v27 = vrot.slane %v3283_v24, 4 }
 0x56e   : > { %v3285_v48 = vadd.f32 %v3284_v27, %v3283_v24 }
 0x570   : > { %v3286_v12 = vrot.slane %v3285_v48, 2 }
 0x572   : > { %v3287_v34 = vadd.f32 %v3286_v12, %v3285_v48 }
 0x574   : > { %v3288_v39 = vrot.slane %v3287_v34, 1 }
 0x576   : > { %v3289_v37 = vadd.f32 %v3288_v39, %v3287_v34 }
 0x578   : > { %3920 = vpush %v3289_v37 }
 0x5a9   : > { %s3921_s2 = spop %3920 }
 0x5aa   : > { %v3291_v43 = vstv %s3921_s2 }
 0x5ab   : > { %3292 = vst [vmem:[%s5287_s13] sm:$0xff] %v3291_v43 }
 0x5fa   : > { %v3884_v49 = vpop.f32.mrb[20].mxu1 }
 0x5fb   : > { %v3885_v50 = vpop.f32.mrb[21].mxu1 }
 0x5fc   : > { %v3886_v51 = vadd.f32 %v3885_v50, %v3884_v49  ;;  %v3887_v52 = vpop.f32.mrb[22].mxu1  ;;  %3305 = sbr.rel (!%p5446_p0) target bundleno = 1568 (0x620), region = 100 }
 0x5fd   : > { %v3888_v53 = vpop.f32.mrb[23].mxu1 }
 0x5fe   : > { %v3259_v44 = vadd.f32 %v3886_v51, %v3836_v61  ;;  %v3889_v46 = vadd.f32 %v3888_v53, %v3887_v52 }
 0x600   : > { %3265 = vst [vmem:[%s600_s8] sm:$0xff] %v3259_v44  ;;  %v3262_v54 = vadd.f32 %v3889_v46, %v3836_v61 }
 0x602   : > { %3266 = vst [vmem:[%s600_s8 + $0x8] sm:$0xff] %v3262_v54 }
 0x603   : > { %s5464_s20 = smov (!%p3308_p8, %s3307_s20), 2 }
 0x604   : > { %s5299_s11 = sshll.u32 %s5464_s20, 7 }
 0x605   : > { %s3312_s26 = ssub.s32 256, %s5299_s11 }
 0x606   : > { %3313 = vsyncadd %s3294_s15, %s3312_s26  ;;  %p3858_p9 = scmp.ne.s32.totalorder %s5299_s11, 0  ;;  %s3867_s10 = sshll.u32 %s4887_s25, 8 }
 0x607   : > { %s5447_s12 = sld [smem:[#allocation38_spill]]  ;;  %s3318_s2 = sshll.u32 %s600_s8, 4  ;;  %s5311_s2 = int_to_ptr.vmem [resolvable:$true] %s3318_s2 }
 0x608   : > { %s4656_s28 = scalar_lea.vmem %s5311_s2, %s5299_s11  ;;  %s4797_s16 = smov [#allocation16]  }
 0x609   : > { %p4657_p7 = scmp.ne.s32.totalorder %s5311_s2, %s4656_s28  ;;  %s4660_s18 = sshll.u32 %s4797_s16, 4  ;;  %s4661_s18 = int_to_ptr.vmem [resolvable:$false] %s4660_s18 }
 0x60a   : > { %s4662_s17 = scalar_lea.vmem %s4661_s18, 512  ;;  %p4663_p1 = scmp.lt.s32.totalorder %s5311_s2, %s4661_s18 }
 0x60b   : > { %p4658_p10 = pnand %p4657_p7, %p3858_p9  ;;  %p4664_p3 = scmp.lt.s32.totalorder %s4662_s17, %s4656_s28 }
 0x60d   : > { %s5309_s21 = scalar_lea.hbm %s5447_s12, %s3867_s10  ;;  %p4659_p12 = pneg %p4658_p10 }
 0x60e   : > { %p4665_p5 = por %p4664_p3, %p4663_p1 }
 0x610   : > { %p4666_p2 = pnand %p4665_p5, %p4659_p12 }
 0x612   : > { %4669 = shalt.err (!%p4666_p2)
}
 0x613   : > { %s4670_s8 = scalar_lea.hbm %s5309_s21, %s5299_s11  ;;  %s4674_s20 = scalar_lea.hbm %s5447_s12, 384 }
 0x614   : > { %p4671_p6 = scmp.ne.s32.totalorder %s5309_s21, %s4670_s8  ;;  %p4675_p0 = scmp.lt.u32.totalorder %s5309_s21, %s5447_s12 }
 0x615   : > { %p4676_p8 = scmp.lt.u32.totalorder %s4674_s20, %s4670_s8  ;;  %p4678_p10 = scmp.lt.u32.totalorder %s4670_s8, %s5309_s21 }
 0x616   : > { %p4672_p11 = pnand %p4671_p6, %p3858_p9 }
 0x617   : > { %p4677_p7 = por %p4676_p8, %p4675_p0 }
 0x618   : > { %p4673_p13 = pneg %p4672_p11 }
 0x619   : > { %p4679_p12 = por %p4678_p10, %p4677_p7 }
 0x61b   : > { %p4680_p1 = pnand %p4679_p12, %p4673_p13 }
 0x61d   : > { %4683 = shalt.err (!%p4680_p1)
}
 0x61e   : > { %s4798_s3 = smov 128   ;;  %s4799_s27 = smov 8  }
 0x61f   : > { %3324 = dma.vmem_to_hbm [thread:$0]  (%p3858_p9), %s5311_s2, %s5299_s11, %s5309_s21, %s3294_s15, %s4798_s3, %s4798_s3, %s4799_s27  }
 0x620 PF: > { %s5448_s28 = sld [smem:[#allocation32_spill]]  ;;  %s3862_s16 = sshll.u32 %s4887_s25, 7 }
 0x621   : > { %s3334_s18 = sshll.u32 %s5287_s13, 4  ;;  %s5449_s14 = sld [smem:[#allocation39_spill]]  ;;  %s3335_s18 = int_to_ptr.vmem [resolvable:$true] %s3334_s18 }
 0x622   : > { %s4684_s20 = scalar_lea.vmem %s3335_s18, 128  ;;  %s4800_s26 = smov [#allocation17]  }
 0x623   : > { %p4685_p3 = scmp.ne.s32.totalorder %s3335_s18, %s4684_s20  ;;  %s4688_s10 = sshll.u32 %s4800_s26, 4  ;;  %s4689_s10 = int_to_ptr.vmem [resolvable:$false] %s4688_s10 }
 0x624   : > { %s4690_s15 = scalar_lea.vmem %s4689_s10, 256  ;;  %p4691_p9 = scmp.lt.s32.totalorder %s3335_s18, %s4689_s10 }
 0x625   : > { %p4692_p11 = scmp.lt.s32.totalorder %s4690_s15, %s4684_s20 }
 0x626   : > { %p5450_p5 = scmp.ne.s32.totalorder %s5448_s28, 0 }
 0x627   : > { %s3332_s19 = scalar_lea.hbm %s5449_s14, %s3862_s16  ;;  %p4693_p13 = por %p4692_p11, %p4691_p9 }
 0x628   : > { %p4686_p2 = pnand %p4685_p3, %p5450_p5 }
 0x62a   : > { %p4687_p6 = pneg %p4686_p2 }
 0x62c   : > { %p4694_p0 = pnand %p4693_p13, %p4687_p6 }
 0x62e   : > { %4697 = shalt.err (!%p4694_p0)
}
 0x62f   : > { %s4698_s25 = scalar_lea.hbm %s3332_s19, 128  ;;  %s4702_s21 = scalar_lea.hbm %s5449_s14, 256 }
 0x630   : > { %p4699_p8 = scmp.ne.s32.totalorder %s3332_s19, %s4698_s25  ;;  %p4703_p12 = scmp.lt.u32.totalorder %s3332_s19, %s5449_s14 }
 0x631   : > { %p4704_p1 = scmp.lt.u32.totalorder %s4702_s21, %s4698_s25  ;;  %p4706_p2 = scmp.lt.u32.totalorder %s4698_s25, %s3332_s19 }
 0x632   : > { %p4700_p7 = pnand %p4699_p8, %p5450_p5 }
 0x633   : > { %p4705_p3 = por %p4704_p1, %p4703_p12 }
 0x634   : > { %p4701_p10 = pneg %p4700_p7 }
 0x635   : > { %p4707_p9 = por %p4706_p2, %p4705_p3 }
 0x637   : > { %p4708_p6 = pnand %p4707_p9, %p4701_p10 }
 0x639   : > { %4711 = shalt.err (!%p4708_p6)
}
 0x63a   : > { %3948 = dma.vmem_to_hbm [thread:$0]  (%p5450_p5), %s3335_s18, 128, %s3332_s19, %s3299_s29  }
 0x63b PF: > { %s5451_s27 = sld [smem:[#allocation29_spill]]  ;;  %s5452_s16 = sld [smem:[#allocation33_spill]] }
 0x641   : > { %s3346_s17 = sand.u32 1, %s5451_s27   ;;  %p5453_p11 = scmp.ne.s32.totalorder %s5452_s16, 0 }
 0x642   : > { %s3347_s8 = scalar_lea.sflag [#allocation4], %s3346_s17 }
 0x643   : > { %p3971_p13 = pnand %p3524_p4, %p5453_p11 }
 0x645   : > { %4753 = dma.done.wait (!%p3971_p13), %s3347_s8, 256  }
 0x646   : > { %4755 = vsyncadd (!%p3971_p13), %s3347_s8, 4294967040  ;;  %s3356_s20 = scalar_lea.sflag [#allocation18], %s3346_s17 }
 0x647   : > { %4757 = dma.done.wait (!%p3971_p13), %s3356_s20, 128  }
 0x648   : > { %4759 = vsyncadd (!%p3971_p13), %s3356_s20, 4294967168  ;;  %s5454_s24 = sld [smem:[#allocation30_spill]]  ;;  %s5455_s28 = sld [smem:[#allocation31_spill]] }
 0x649   : > { %s5456_s21 = smov %s4766_s22  ;;  %s5457_s22 = smov %s4770_s23 }
 0x64e   : > { %p35_p5 = scmp.ge.s32.totalorder %s5454_s24, 4   ;;  %s5458_s23 = smov %s5455_s28 }
 0x650   :  { %37 = sbr.rel (!%p35_p5) target bundleno = 19 (0x13), region = 178 }
 0x657   :  { %3361 = vsyncpa [#allocation3], 1 }
 0x658   :  { %3363 = vsyncpa [#allocation3 + $0x1], 1 }
 0x659   :  { %3364 = vsyncpa [#allocation6], 1 }
 0x65a   :  { %3366 = vsyncpa [#allocation6 + $0x1], 1 }
 0x65b   :  { %3367 = vsyncpa [#allocation9], 1 }
 0x65c   :  { %3368 = vsyncpa [#allocation12], 1 }
 0x65d   :  { %3369 = vsyncpa [#allocation15], 1 }
 0x65e   :  { %3370 = vsyncpa [#allocation4], 1 }
 0x65f   :  { %3372 = vsyncpa [#allocation4 + $0x1], 1 }
 0x660   :  { %3373 = vsyncpa [#allocation18], 1 }
 0x661   :  { %3375 = vsyncpa [#allocation18 + $0x1], 1 }

</bundles_post_ra>
